<compile_context>
chip_gen: v7x
topology: tpu7x:2x2x1
jax: 0.10.0
libtpu: 0.0.40
codegen_flags: <defaults>
</compile_context>

<pallas_src>
import math
from functools import partial

import jax
import jax.numpy as jnp
from jax.experimental import pallas as pl
from jax.experimental.pallas import tpu as pltpu


def _softmax_rows(s, approx_recip):
    """Row softmax in f32 (max-subtracted); reciprocal optionally on the EUP."""
    s = s - jnp.max(s, axis=-1, keepdims=True)
    p = jnp.exp(s)
    return p * pl.reciprocal(jnp.sum(p, axis=-1, keepdims=True), approx=approx_recip)


def _attn_kernel_headbatched(x_ref, wqkv_ref, bias_ref, wo_ref, bo_ref, o_ref, *,
                             m_tile: int, n: int, num_heads: int, head_dim: int,
                             inner: int, mxu_bf16: bool, approx_recip: bool):
    """Primary kernel: heads batched into the einsums (no per-head lane slices)."""
    x = x_ref[...]                                             # (rows, d)
    if mxu_bf16:
        x = x.astype(jnp.bfloat16)
    # Fused q/k/v projection: one MXU matmul, softmax scale pre-folded into Wq.
    qkv = jnp.dot(x, wqkv_ref[...], preferred_element_type=jnp.float32)
    if mxu_bf16:
        qkv = qkv.astype(jnp.bfloat16)                         # halve live footprint
    q = qkv[:, :inner].reshape(m_tile, n, num_heads, head_dim)
    k = qkv[:, inner:2 * inner].reshape(m_tile, n, num_heads, head_dim)
    v = qkv[:, 2 * inner:].reshape(m_tile, n, num_heads, head_dim)

    s = jnp.einsum('bqhd,bkhd->bhqk', q, k,
                   preferred_element_type=jnp.float32)         # (b, h, n, n) f32
    s = s + bias_ref[...][None]                                # bias (h,n,n) bcast over b
    p = _softmax_rows(s, approx_recip)                         # f32
    if mxu_bf16:
        p = p.astype(jnp.bfloat16)
    o = jnp.einsum('bhqk,bkhd->bqhd', p, v,
                   preferred_element_type=jnp.float32)         # (b, n, h, hd) f32
    out = o.reshape(m_tile * n, inner)
    if mxu_bf16:
        out = out.astype(jnp.bfloat16)
    # Output projection (Linear with bias); dropout is identity at inference.
    y = jnp.dot(out, wo_ref[...], preferred_element_type=jnp.float32) + bo_ref[...]
    o_ref[...] = y.astype(o_ref.dtype)


def _attn_kernel_headloop(x_ref, wqkv_ref, bias_ref, wo_ref, bo_ref, o_ref, *,
                          m_tile: int, n: int, num_heads: int, head_dim: int,
                          inner: int, mxu_bf16: bool, approx_recip: bool):
    """Fallback kernel: static head loop, single-batch-dim einsums only."""
    x = x_ref[...]                                             # (rows, d)
    if mxu_bf16:
        x = x.astype(jnp.bfloat16)
    qkv = jnp.dot(x, wqkv_ref[...], preferred_element_type=jnp.float32)
    if mxu_bf16:
        qkv = qkv.astype(jnp.bfloat16)

    head_outs = []
    for h in range(num_heads):                                 # static unroll
        lo = h * head_dim
        q_h = qkv[:, lo:lo + head_dim].reshape(m_tile, n, head_dim)
        k_h = qkv[:, inner + lo:inner + lo + head_dim].reshape(m_tile, n, head_dim)
        v_h = qkv[:, 2 * inner + lo:2 * inner + lo + head_dim].reshape(m_tile, n, head_dim)
        s = jnp.einsum('bqd,bkd->bqk', q_h, k_h,
                       preferred_element_type=jnp.float32)
        s = s + bias_ref[h][None]
        p = _softmax_rows(s, approx_recip)
        if mxu_bf16:
            p = p.astype(jnp.bfloat16)
        o_h = jnp.einsum('bqk,bkd->bqd', p, v_h,
                         preferred_element_type=jnp.float32)
        head_outs.append(o_h.reshape(m_tile * n, head_dim))

    out = jnp.concatenate(head_outs, axis=-1)                  # (rows, inner)
    if mxu_bf16:
        out = out.astype(jnp.bfloat16)
    y = jnp.dot(out, wo_ref[...], preferred_element_type=jnp.float32) + bo_ref[...]
    o_ref[...] = y.astype(o_ref.dtype)


# (head_batched, single_buffer_invariants), in order of preference.  Later
# entries use only long-established Mosaic lowering patterns.
_ATTEMPTS = ((True, True), (True, False), (False, True), (False, False))
_FIRST_WORKING_ATTEMPT = [0]   # cached across calls so we don't re-probe failures


def gridded_mhsa_te_attention(x, wq, wk, wv, attn_bias, wo, bo, *,
                              num_heads: int, head_dim: int,
                              m_tile: int | None = None,
                              mxu_bf16: bool = True,
                              approx_recip: bool = False):
    m, n, d = x.shape
    inner = num_heads * head_dim
    scale = head_dim ** (-0.5)
    if m_tile is None:
        # >= 2 grid steps so the 'parallel' axis can shard across both
        # TensorCores on v7x; on 1-TC v5e/v6e the extra step is ~0.35 us.
        m_tile = m // 2 if (m >= 2 and m % 2 == 0) else m
    assert m % m_tile == 0
    rows = m_tile * n

    # Fused QKV weight; scale folded into Q columns *before* any bf16 cast.
    wqkv = jnp.concatenate([wq * scale, wk, wv], axis=1)        # (d, 3*inner)
    wo_in = wo
    if mxu_bf16:
        wqkv = wqkv.astype(jnp.bfloat16)
        wo_in = wo.astype(jnp.bfloat16)
    bo2 = bo.reshape(1, d)
    x2 = x.reshape(m * n, d)                                    # free XLA reshape

    # Advisory scheduling hint for XLA around the custom call.
    flops = (2 * m * n * d * 3 * inner                          # fused QKV projection
             + 4 * m * num_heads * n * n * head_dim             # QK^T + PV
             + 2 * m * n * inner * d)                           # output projection
    wbytes = 2 if mxu_bf16 else 4
    cost = pl.CostEstimate(
        flops=int(flops),
        transcendentals=int(m * num_heads * n * n),              # exp per score
        bytes_accessed=int(m * n * d * 4 * 2                     # x in + out
                           + d * 3 * inner * wbytes + inner * d * wbytes
                           + num_heads * n * n * 4 + d * 4))

    # VMEM budget (worst case: everything double-buffered) -> explicit limit,
    # clamped to the smallest physical VMEM across generations (v7x: 64 MiB).
    vmem_est = (2 * 2 * rows * d * 4                             # in/out slabs, dbl buf
                + 2 * (d * 3 * inner * wbytes + inner * d * wbytes
                       + num_heads * n * n * 4 + d * 4)          # weights/bias
                + rows * 3 * inner * 4                           # qkv live value
                + 2 * m_tile * num_heads * n * n * 4             # s and p
                + rows * inner * 4)                              # pre-Wo head output
    vmem_limit = int(min(64 << 20, max(16 << 20, 2 * vmem_est)))

    def run(head_batched: bool, single_buffer_invariants: bool):
        kern = _attn_kernel_headbatched if head_batched else _attn_kernel_headloop
        kernel = partial(kern, m_tile=m_tile, n=n, num_heads=num_heads,
                         head_dim=head_dim, inner=inner, mxu_bf16=mxu_bf16,
                         approx_recip=approx_recip)

        def inv_spec(shape, imap):
            # Grid-invariant operands: single-buffer (their index_map is
            # constant, so they are never re-fetched) to halve their VMEM use.
            if single_buffer_invariants:
                return pl.BlockSpec(shape, imap, pipeline_mode=pl.Buffered(1))
            return pl.BlockSpec(shape, imap)

        return pl.pallas_call(
            kernel,
            out_shape=jax.ShapeDtypeStruct((m * n, d), x.dtype),
            grid_spec=pltpu.PrefetchScalarGridSpec(
                num_scalar_prefetch=0,
                grid=(m // m_tile,),
                in_specs=[
                    pl.BlockSpec((rows, d), lambda i: (i, 0)),              # x slab
                    inv_spec((d, 3 * inner), lambda i: (0, 0)),             # Wqkv
                    inv_spec((num_heads, n, n), lambda i: (0, 0, 0)),       # attn_bias
                    inv_spec((inner, d), lambda i: (0, 0)),                 # Wo
                    inv_spec((1, d), lambda i: (0, 0)),                     # bo
                ],
                out_specs=pl.BlockSpec((rows, d), lambda i: (i, 0)),
            ),
            compiler_params=pltpu.CompilerParams(
                dimension_semantics=("parallel",),
                vmem_limit_bytes=vmem_limit),
            cost_estimate=cost,
        )(x2, wqkv, attn_bias, wo_in, bo2)

    last_exc = None
    for ai in range(_FIRST_WORKING_ATTEMPT[0], len(_ATTEMPTS)):
        head_batched, single_buf = _ATTEMPTS[ai]
        try:
            out2 = jax.block_until_ready(run(head_batched, single_buf))
            _FIRST_WORKING_ATTEMPT[0] = ai
            return out2.reshape(m, n, d)
        except Exception as exc:  # lowering support varies; fall back to the
            last_exc = exc        # conservative formulation rather than fail.
    raise last_exc


def reference_forward(x, wq, wk, wv, attn_bias, wo, bo,
                      *, num_heads: int, head_dim: int):
    m, n, d = x.shape
    scale = head_dim ** (-0.5)
    q = x @ wq
    k = x @ wk
    v = x @ wv
    # 'm n (h d) -> m h n d'
    q = q.reshape(m, n, num_heads, head_dim).transpose(0, 2, 1, 3)
    k = k.reshape(m, n, num_heads, head_dim).transpose(0, 2, 1, 3)
    v = v.reshape(m, n, num_heads, head_dim).transpose(0, 2, 1, 3)
    s = scale * jnp.einsum('mhqd,mhkd->mhqk', q, k) + attn_bias[None]
    p = jax.nn.softmax(s, axis=-1)
    o = jnp.einsum('mhqk,mhkd->mhqd', p, v)
    o = o.transpose(0, 2, 1, 3).reshape(m, n, num_heads * head_dim)
    return o @ wo + bo


if __name__ == "__main__":
    # Module hyperparameters (small, consistent with the forward's assertions).
    embed_dim = 32
    num_heads = 4
    head_dim = 8
    grid_shape = (4, 4)
    n = math.prod(grid_shape)          # 16 grid points
    inner_dim = num_heads * head_dim   # 32
    m = 2                              # batch

    key = jax.random.PRNGKey(0)
    kx, kq, kk, kv, kb, ko, kbo = jax.random.split(key, 7)

    x = jax.random.normal(kx, (m, n, embed_dim), dtype=jnp.float32)

    # Deterministic synthetic parameters (PyTorch Linear stores (out,in); we
    # store the transposed (in,out) layout so y = x @ W).
    wq = 0.1 * jax.random.normal(kq, (embed_dim, inner_dim), dtype=jnp.float32)
    wk = 0.1 * jax.random.normal(kk, (embed_dim, inner_dim), dtype=jnp.float32)
    wv = 0.1 * jax.random.normal(kv, (embed_dim, inner_dim), dtype=jnp.float32)
    attn_bias = jax.random.normal(kb, (num_heads, n, n), dtype=jnp.float32)
    wo = 0.1 * jax.random.normal(ko, (inner_dim, embed_dim), dtype=jnp.float32)
    bo = 0.1 * jax.random.normal(kbo, (embed_dim,), dtype=jnp.float32)

    ref = reference_forward(x, wq, wk, wv, attn_bias, wo, bo,
                            num_heads=num_heads, head_dim=head_dim)

    # 1) Exact path (f32 MXU operands, exact reciprocal): tight correctness.
    out_exact = gridded_mhsa_te_attention(
        x, wq, wk, wv, attn_bias, wo, bo, num_heads=num_heads,
        head_dim=head_dim, mxu_bf16=False, approx_recip=False)
    out_exact = jax.block_until_ready(out_exact)
    assert out_exact.shape == (m, n, embed_dim)
    # Slightly relaxed vs 1e-5: the softmax scale is folded into Wq host-side.
    assert jnp.allclose(out_exact, ref, atol=2e-5, rtol=2e-5), (
        float(jnp.max(jnp.abs(out_exact - ref))))

    # 2) Production path (bf16 MXU operands with f32 accumulation, EUP
    #    reciprocal): looser tolerance from bf16 rounding (~1e-3 class).
    out_fast = gridded_mhsa_te_attention(
        x, wq, wk, wv, attn_bias, wo, bo, num_heads=num_heads,
        head_dim=head_dim, mxu_bf16=True, approx_recip=True)
    out_fast = jax.block_until_ready(out_fast)
    assert out_fast.shape == (m, n, embed_dim)
    assert jnp.allclose(out_fast, ref, atol=3e-2, rtol=3e-2), (
        float(jnp.max(jnp.abs(out_fast - ref))))

    print("KERNEL_OK")
</pallas_src>

<mosaic_0001>
module attributes {stable_mosaic.version = 11 : i64} {
  func.func @_attn_kernel_headloop(%arg0: i32, %arg1: memref<16x32xf32, #tpu.memory_space<vmem>>, %arg2: memref<32x96xf32, #tpu.memory_space<vmem>>, %arg3: memref<4x16x16xf32, #tpu.memory_space<vmem>>, %arg4: memref<32x32xf32, #tpu.memory_space<vmem>>, %arg5: memref<1x32xf32, #tpu.memory_space<vmem>>, %arg6: memref<16x32xf32, #tpu.memory_space<vmem>>) attributes {dimension_semantics = [#tpu.dimension_semantics<parallel>], iteration_bounds = array<i64: 2>, scalar_prefetch = 0 : i64, scratch_operands = 0 : i64, tpu.core_type = #tpu.core_type<tc>, window_params = [{transform_indices = @transform_0, window_bounds = array<i64: 16, 32>}, {pipeline_mode = #tpu.pipeline_mode<synchronous>, transform_indices = @transform_1, window_bounds = array<i64: 32, 96>}, {pipeline_mode = #tpu.pipeline_mode<synchronous>, transform_indices = @transform_2, window_bounds = array<i64: 4, 16, 16>}, {pipeline_mode = #tpu.pipeline_mode<synchronous>, transform_indices = @transform_3, window_bounds = array<i64: 32, 32>}, {pipeline_mode = #tpu.pipeline_mode<synchronous>, transform_indices = @transform_4, window_bounds = array<i64: 1, 32>}, {transform_indices = @transform_5, window_bounds = array<i64: 16, 32>}]} {
    %c0 = arith.constant 0 : index
    %c0_0 = arith.constant 0 : index
    %0 = vector.load %arg1[%c0, %c0_0] : memref<16x32xf32, #tpu.memory_space<vmem>>, vector<16x32xf32>
    %c0_1 = arith.constant 0 : index
    %c0_2 = arith.constant 0 : index
    %1 = vector.load %arg2[%c0_1, %c0_2] : memref<32x96xf32, #tpu.memory_space<vmem>>, vector<32x96xf32>
    %cst = arith.constant dense<0.000000e+00> : vector<16x96xf32>
    %2 = tpu.matmul %0, %1, %cst {dimension_numbers = #tpu.dot_dimension_numbers<[1], [0], [0], [1], [0, 0, 1, 1], [], []>} : vector<16x32xf32>, vector<32x96xf32>, vector<16x96xf32> -> vector<16x96xf32>
    %3 = vector.extract_strided_slice %2 {offsets = [0, 0], sizes = [16, 8], strides = [1, 1]} : vector<16x96xf32> to vector<16x8xf32>
    %4 = vector.shape_cast %3 : vector<16x8xf32> to vector<1x16x8xf32>
    %5 = vector.extract_strided_slice %2 {offsets = [0, 32], sizes = [16, 8], strides = [1, 1]} : vector<16x96xf32> to vector<16x8xf32>
    %6 = vector.shape_cast %5 : vector<16x8xf32> to vector<1x16x8xf32>
    %7 = vector.extract_strided_slice %2 {offsets = [0, 64], sizes = [16, 8], strides = [1, 1]} : vector<16x96xf32> to vector<16x8xf32>
    %8 = vector.shape_cast %7 : vector<16x8xf32> to vector<1x16x8xf32>
    "tpu.trace_start"() <{level = 10 : i32, message = "bqd,bkd->bqk"}> : () -> ()
    %cst_3 = arith.constant dense<0.000000e+00> : vector<1x16x16xf32>
    %9 = tpu.matmul %4, %6, %cst_3 {dimension_numbers = #tpu.dot_dimension_numbers<[2], [2], [1], [1], [0, 0, 0, 1, 1, 1], [0], [0]>} : vector<1x16x8xf32>, vector<1x16x8xf32>, vector<1x16x16xf32> -> vector<1x16x16xf32>
    "tpu.trace_stop"() : () -> ()
    %c0_4 = arith.constant 0 : index
    %c0_5 = arith.constant 0 : index
    %c0_6 = arith.constant 0 : index
    %10 = vector.load %arg3[%c0_4, %c0_5, %c0_6] : memref<4x16x16xf32, #tpu.memory_space<vmem>>, vector<1x16x16xf32>
    %11 = vector.shape_cast %10 : vector<1x16x16xf32> to vector<16x16xf32>
    %12 = vector.shape_cast %11 : vector<16x16xf32> to vector<1x16x16xf32>
    %13 = arith.addf %9, %12 : vector<1x16x16xf32>
    %cst_7 = arith.constant dense<0xFF800000> : vector<1x16xf32>
    %14 = vector.multi_reduction <maximumf>, %13, %cst_7 [2] : vector<1x16x16xf32> to vector<1x16xf32>
    %15 = vector.shape_cast %14 : vector<1x16xf32> to vector<1x16x1xf32>
    %16 = vector.broadcast %15 : vector<1x16x1xf32> to vector<1x16x16xf32>
    %17 = arith.subf %13, %16 : vector<1x16x16xf32>
    %18 = math.exp %17 : vector<1x16x16xf32>
    %cst_8 = arith.constant dense<0.000000e+00> : vector<1x16xf32>
    %19 = vector.multi_reduction <add>, %18, %cst_8 [2] : vector<1x16x16xf32> to vector<1x16xf32>
    %20 = vector.shape_cast %19 : vector<1x16xf32> to vector<1x16x1xf32>
    %21 = tpu.reciprocal %20 : vector<1x16x1xf32> -> vector<1x16x1xf32>
    %22 = vector.broadcast %21 : vector<1x16x1xf32> to vector<1x16x16xf32>
    %23 = arith.mulf %18, %22 : vector<1x16x16xf32>
    "tpu.trace_start"() <{level = 10 : i32, message = "bqk,bkd->bqd"}> : () -> ()
    %cst_9 = arith.constant dense<0.000000e+00> : vector<1x16x8xf32>
    %24 = tpu.matmul %23, %8, %cst_9 {dimension_numbers = #tpu.dot_dimension_numbers<[2], [1], [1], [2], [0, 0, 0, 1, 1, 2], [0], [0]>} : vector<1x16x16xf32>, vector<1x16x8xf32>, vector<1x16x8xf32> -> vector<1x16x8xf32>
    "tpu.trace_stop"() : () -> ()
    %25 = vector.shape_cast %24 : vector<1x16x8xf32> to vector<16x8xf32>
    %26 = vector.extract_strided_slice %2 {offsets = [0, 8], sizes = [16, 8], strides = [1, 1]} : vector<16x96xf32> to vector<16x8xf32>
    %27 = vector.shape_cast %26 : vector<16x8xf32> to vector<1x16x8xf32>
    %28 = vector.extract_strided_slice %2 {offsets = [0, 40], sizes = [16, 8], strides = [1, 1]} : vector<16x96xf32> to vector<16x8xf32>
    %29 = vector.shape_cast %28 : vector<16x8xf32> to vector<1x16x8xf32>
    %30 = vector.extract_strided_slice %2 {offsets = [0, 72], sizes = [16, 8], strides = [1, 1]} : vector<16x96xf32> to vector<16x8xf32>
    %31 = vector.shape_cast %30 : vector<16x8xf32> to vector<1x16x8xf32>
    "tpu.trace_start"() <{level = 10 : i32, message = "bqd,bkd->bqk"}> : () -> ()
    %cst_10 = arith.constant dense<0.000000e+00> : vector<1x16x16xf32>
    %32 = tpu.matmul %27, %29, %cst_10 {dimension_numbers = #tpu.dot_dimension_numbers<[2], [2], [1], [1], [0, 0, 0, 1, 1, 1], [0], [0]>} : vector<1x16x8xf32>, vector<1x16x8xf32>, vector<1x16x16xf32> -> vector<1x16x16xf32>
    "tpu.trace_stop"() : () -> ()
    %c1 = arith.constant 1 : index
    %c0_11 = arith.constant 0 : index
    %c0_12 = arith.constant 0 : index
    %33 = vector.load %arg3[%c1, %c0_11, %c0_12] : memref<4x16x16xf32, #tpu.memory_space<vmem>>, vector<1x16x16xf32>
    %34 = vector.shape_cast %33 : vector<1x16x16xf32> to vector<16x16xf32>
    %35 = vector.shape_cast %34 : vector<16x16xf32> to vector<1x16x16xf32>
    %36 = arith.addf %32, %35 : vector<1x16x16xf32>
    %cst_13 = arith.constant dense<0xFF800000> : vector<1x16xf32>
    %37 = vector.multi_reduction <maximumf>, %36, %cst_13 [2] : vector<1x16x16xf32> to vector<1x16xf32>
    %38 = vector.shape_cast %37 : vector<1x16xf32> to vector<1x16x1xf32>
    %39 = vector.broadcast %38 : vector<1x16x1xf32> to vector<1x16x16xf32>
    %40 = arith.subf %36, %39 : vector<1x16x16xf32>
    %41 = math.exp %40 : vector<1x16x16xf32>
    %cst_14 = arith.constant dense<0.000000e+00> : vector<1x16xf32>
    %42 = vector.multi_reduction <add>, %41, %cst_14 [2] : vector<1x16x16xf32> to vector<1x16xf32>
    %43 = vector.shape_cast %42 : vector<1x16xf32> to vector<1x16x1xf32>
    %44 = tpu.reciprocal %43 : vector<1x16x1xf32> -> vector<1x16x1xf32>
    %45 = vector.broadcast %44 : vector<1x16x1xf32> to vector<1x16x16xf32>
    %46 = arith.mulf %41, %45 : vector<1x16x16xf32>
    "tpu.trace_start"() <{level = 10 : i32, message = "bqk,bkd->bqd"}> : () -> ()
    %cst_15 = arith.constant dense<0.000000e+00> : vector<1x16x8xf32>
    %47 = tpu.matmul %46, %31, %cst_15 {dimension_numbers = #tpu.dot_dimension_numbers<[2], [1], [1], [2], [0, 0, 0, 1, 1, 2], [0], [0]>} : vector<1x16x16xf32>, vector<1x16x8xf32>, vector<1x16x8xf32> -> vector<1x16x8xf32>
    "tpu.trace_stop"() : () -> ()
    %48 = vector.shape_cast %47 : vector<1x16x8xf32> to vector<16x8xf32>
    %49 = vector.extract_strided_slice %2 {offsets = [0, 16], sizes = [16, 8], strides = [1, 1]} : vector<16x96xf32> to vector<16x8xf32>
    %50 = vector.shape_cast %49 : vector<16x8xf32> to vector<1x16x8xf32>
    %51 = vector.extract_strided_slice %2 {offsets = [0, 48], sizes = [16, 8], strides = [1, 1]} : vector<16x96xf32> to vector<16x8xf32>
    %52 = vector.shape_cast %51 : vector<16x8xf32> to vector<1x16x8xf32>
    %53 = vector.extract_strided_slice %2 {offsets = [0, 80], sizes = [16, 8], strides = [1, 1]} : vector<16x96xf32> to vector<16x8xf32>
    %54 = vector.shape_cast %53 : vector<16x8xf32> to vector<1x16x8xf32>
    "tpu.trace_start"() <{level = 10 : i32, message = "bqd,bkd->bqk"}> : () -> ()
    %cst_16 = arith.constant dense<0.000000e+00> : vector<1x16x16xf32>
    %55 = tpu.matmul %50, %52, %cst_16 {dimension_numbers = #tpu.dot_dimension_numbers<[2], [2], [1], [1], [0, 0, 0, 1, 1, 1], [0], [0]>} : vector<1x16x8xf32>, vector<1x16x8xf32>, vector<1x16x16xf32> -> vector<1x16x16xf32>
    "tpu.trace_stop"() : () -> ()
    %c2 = arith.constant 2 : index
    %c0_17 = arith.constant 0 : index
    %c0_18 = arith.constant 0 : index
    %56 = vector.load %arg3[%c2, %c0_17, %c0_18] : memref<4x16x16xf32, #tpu.memory_space<vmem>>, vector<1x16x16xf32>
    %57 = vector.shape_cast %56 : vector<1x16x16xf32> to vector<16x16xf32>
    %58 = vector.shape_cast %57 : vector<16x16xf32> to vector<1x16x16xf32>
    %59 = arith.addf %55, %58 : vector<1x16x16xf32>
    %cst_19 = arith.constant dense<0xFF800000> : vector<1x16xf32>
    %60 = vector.multi_reduction <maximumf>, %59, %cst_19 [2] : vector<1x16x16xf32> to vector<1x16xf32>
    %61 = vector.shape_cast %60 : vector<1x16xf32> to vector<1x16x1xf32>
    %62 = vector.broadcast %61 : vector<1x16x1xf32> to vector<1x16x16xf32>
    %63 = arith.subf %59, %62 : vector<1x16x16xf32>
    %64 = math.exp %63 : vector<1x16x16xf32>
    %cst_20 = arith.constant dense<0.000000e+00> : vector<1x16xf32>
    %65 = vector.multi_reduction <add>, %64, %cst_20 [2] : vector<1x16x16xf32> to vector<1x16xf32>
    %66 = vector.shape_cast %65 : vector<1x16xf32> to vector<1x16x1xf32>
    %67 = tpu.reciprocal %66 : vector<1x16x1xf32> -> vector<1x16x1xf32>
    %68 = vector.broadcast %67 : vector<1x16x1xf32> to vector<1x16x16xf32>
    %69 = arith.mulf %64, %68 : vector<1x16x16xf32>
    "tpu.trace_start"() <{level = 10 : i32, message = "bqk,bkd->bqd"}> : () -> ()
    %cst_21 = arith.constant dense<0.000000e+00> : vector<1x16x8xf32>
    %70 = tpu.matmul %69, %54, %cst_21 {dimension_numbers = #tpu.dot_dimension_numbers<[2], [1], [1], [2], [0, 0, 0, 1, 1, 2], [0], [0]>} : vector<1x16x16xf32>, vector<1x16x8xf32>, vector<1x16x8xf32> -> vector<1x16x8xf32>
    "tpu.trace_stop"() : () -> ()
    %71 = vector.shape_cast %70 : vector<1x16x8xf32> to vector<16x8xf32>
    %72 = vector.extract_strided_slice %2 {offsets = [0, 24], sizes = [16, 8], strides = [1, 1]} : vector<16x96xf32> to vector<16x8xf32>
    %73 = vector.shape_cast %72 : vector<16x8xf32> to vector<1x16x8xf32>
    %74 = vector.extract_strided_slice %2 {offsets = [0, 56], sizes = [16, 8], strides = [1, 1]} : vector<16x96xf32> to vector<16x8xf32>
    %75 = vector.shape_cast %74 : vector<16x8xf32> to vector<1x16x8xf32>
    %76 = vector.extract_strided_slice %2 {offsets = [0, 88], sizes = [16, 8], strides = [1, 1]} : vector<16x96xf32> to vector<16x8xf32>
    %77 = vector.shape_cast %76 : vector<16x8xf32> to vector<1x16x8xf32>
    "tpu.trace_start"() <{level = 10 : i32, message = "bqd,bkd->bqk"}> : () -> ()
    %cst_22 = arith.constant dense<0.000000e+00> : vector<1x16x16xf32>
    %78 = tpu.matmul %73, %75, %cst_22 {dimension_numbers = #tpu.dot_dimension_numbers<[2], [2], [1], [1], [0, 0, 0, 1, 1, 1], [0], [0]>} : vector<1x16x8xf32>, vector<1x16x8xf32>, vector<1x16x16xf32> -> vector<1x16x16xf32>
    "tpu.trace_stop"() : () -> ()
    %c3 = arith.constant 3 : index
    %c0_23 = arith.constant 0 : index
    %c0_24 = arith.constant 0 : index
    %79 = vector.load %arg3[%c3, %c0_23, %c0_24] : memref<4x16x16xf32, #tpu.memory_space<vmem>>, vector<1x16x16xf32>
    %80 = vector.shape_cast %79 : vector<1x16x16xf32> to vector<16x16xf32>
    %81 = vector.shape_cast %80 : vector<16x16xf32> to vector<1x16x16xf32>
    %82 = arith.addf %78, %81 : vector<1x16x16xf32>
    %cst_25 = arith.constant dense<0xFF800000> : vector<1x16xf32>
    %83 = vector.multi_reduction <maximumf>, %82, %cst_25 [2] : vector<1x16x16xf32> to vector<1x16xf32>
    %84 = vector.shape_cast %83 : vector<1x16xf32> to vector<1x16x1xf32>
    %85 = vector.broadcast %84 : vector<1x16x1xf32> to vector<1x16x16xf32>
    %86 = arith.subf %82, %85 : vector<1x16x16xf32>
    %87 = math.exp %86 : vector<1x16x16xf32>
    %cst_26 = arith.constant dense<0.000000e+00> : vector<1x16xf32>
    %88 = vector.multi_reduction <add>, %87, %cst_26 [2] : vector<1x16x16xf32> to vector<1x16xf32>
    %89 = vector.shape_cast %88 : vector<1x16xf32> to vector<1x16x1xf32>
    %90 = tpu.reciprocal %89 : vector<1x16x1xf32> -> vector<1x16x1xf32>
    %91 = vector.broadcast %90 : vector<1x16x1xf32> to vector<1x16x16xf32>
    %92 = arith.mulf %87, %91 : vector<1x16x16xf32>
    "tpu.trace_start"() <{level = 10 : i32, message = "bqk,bkd->bqd"}> : () -> ()
    %cst_27 = arith.constant dense<0.000000e+00> : vector<1x16x8xf32>
    %93 = tpu.matmul %92, %77, %cst_27 {dimension_numbers = #tpu.dot_dimension_numbers<[2], [1], [1], [2], [0, 0, 0, 1, 1, 2], [0], [0]>} : vector<1x16x16xf32>, vector<1x16x8xf32>, vector<1x16x8xf32> -> vector<1x16x8xf32>
    "tpu.trace_stop"() : () -> ()
    %94 = vector.shape_cast %93 : vector<1x16x8xf32> to vector<16x8xf32>
    %95 = tpu.concatenate %25, %48, %71, %94 in 1 : vector<16x8xf32>, vector<16x8xf32>, vector<16x8xf32>, vector<16x8xf32> -> vector<16x32xf32>
    %c0_28 = arith.constant 0 : index
    %c0_29 = arith.constant 0 : index
    %96 = vector.load %arg4[%c0_28, %c0_29] : memref<32x32xf32, #tpu.memory_space<vmem>>, vector<32x32xf32>
    %cst_30 = arith.constant dense<0.000000e+00> : vector<16x32xf32>
    %97 = tpu.matmul %95, %96, %cst_30 {dimension_numbers = #tpu.dot_dimension_numbers<[1], [0], [0], [1], [0, 0, 1, 1], [], []>} : vector<16x32xf32>, vector<32x32xf32>, vector<16x32xf32> -> vector<16x32xf32>
    %c0_31 = arith.constant 0 : index
    %c0_32 = arith.constant 0 : index
    %98 = vector.load %arg5[%c0_31, %c0_32] : memref<1x32xf32, #tpu.memory_space<vmem>>, vector<1x32xf32>
    %99 = vector.broadcast %98 : vector<1x32xf32> to vector<16x32xf32>
    %100 = arith.addf %97, %99 : vector<16x32xf32>
    %c0_33 = arith.constant 0 : index
    %c0_34 = arith.constant 0 : index
    %101 = vector.load %arg6[%c0_33, %c0_34] : memref<16x32xf32, #tpu.memory_space<vmem>>, vector<16x32xf32>
    tpu.vector_store %arg6[%c0_33, %c0_34], %100 {strides = array<i32>} : memref<16x32xf32, #tpu.memory_space<vmem>>, vector<16x32xf32>,
    return
  }
  func.func @transform_0(%arg0: i32) -> (i32, i32) {
    %c0_i32 = arith.constant 0 : i32
    %c0_i32_0 = arith.constant 0 : i32
    return %arg0, %c0_i32 : i32, i32
  }
  func.func @transform_1(%arg0: i32) -> (i32, i32) {
    %c0_i32 = arith.constant 0 : i32
    %c0_i32_0 = arith.constant 0 : i32
    %c0_i32_1 = arith.constant 0 : i32
    return %c0_i32, %c0_i32_0 : i32, i32
  }
  func.func @transform_2(%arg0: i32) -> (i32, i32, i32) {
    %c0_i32 = arith.constant 0 : i32
    %c0_i32_0 = arith.constant 0 : i32
    %c0_i32_1 = arith.constant 0 : i32
    %c0_i32_2 = arith.constant 0 : i32
    return %c0_i32, %c0_i32_0, %c0_i32_1 : i32, i32, i32
  }
  func.func @transform_3(%arg0: i32) -> (i32, i32) {
    %c0_i32 = arith.constant 0 : i32
    %c0_i32_0 = arith.constant 0 : i32
    %c0_i32_1 = arith.constant 0 : i32
    return %c0_i32, %c0_i32_0 : i32, i32
  }
  func.func @transform_4(%arg0: i32) -> (i32, i32) {
    %c0_i32 = arith.constant 0 : i32
    %c0_i32_0 = arith.constant 0 : i32
    %c0_i32_1 = arith.constant 0 : i32
    return %c0_i32, %c0_i32_0 : i32, i32
  }
  func.func @transform_5(%arg0: i32) -> (i32, i32) {
    %c0_i32 = arith.constant 0 : i32
    %c0_i32_0 = arith.constant 0 : i32
    return %arg0, %c0_i32 : i32, i32
  }
}

module attributes {stable_mosaic.version = 11 : i64} {
  func.func @_attn_kernel_headloop(%arg0: i32, %arg1: memref<16x32xf32, #tpu.memory_space<vmem>>, %arg2: memref<32x96xf32, #tpu.memory_space<vmem>>, %arg3: memref<4x16x16xf32, #tpu.memory_space<vmem>>, %arg4: memref<32x32xf32, #tpu.memory_space<vmem>>, %arg5: memref<1x32xf32, #tpu.memory_space<vmem>>, %arg6: memref<16x32xf32, #tpu.memory_space<vmem>>) attributes {dimension_semantics = [#tpu.dimension_semantics<parallel>], iteration_bounds = array<i64: 2>, scalar_prefetch = 0 : i64, scratch_operands = 0 : i64, tpu.core_type = #tpu.core_type<tc>, window_params = [{transform_indices = @transform_0, window_bounds = array<i64: 16, 32>}, {pipeline_mode = #tpu.pipeline_mode<synchronous>, transform_indices = @transform_1, window_bounds = array<i64: 32, 96>}, {pipeline_mode = #tpu.pipeline_mode<synchronous>, transform_indices = @transform_2, window_bounds = array<i64: 4, 16, 16>}, {pipeline_mode = #tpu.pipeline_mode<synchronous>, transform_indices = @transform_3, window_bounds = array<i64: 32, 32>}, {pipeline_mode = #tpu.pipeline_mode<synchronous>, transform_indices = @transform_4, window_bounds = array<i64: 1, 32>}, {transform_indices = @transform_5, window_bounds = array<i64: 16, 32>}]} {
    %c0 = arith.constant 0 : index
    %c0_0 = arith.constant 0 : index
    %0 = vector.load %arg1[%c0, %c0_0] : memref<16x32xf32, #tpu.memory_space<vmem>>, vector<16x32xf32>
    %c0_1 = arith.constant 0 : index
    %c0_2 = arith.constant 0 : index
    %1 = vector.load %arg2[%c0_1, %c0_2] : memref<32x96xf32, #tpu.memory_space<vmem>>, vector<32x96xf32>
    %cst = arith.constant dense<0.000000e+00> : vector<16x96xf32>
    %2 = tpu.matmul %0, %1, %cst {dimension_numbers = #tpu.dot_dimension_numbers<[1], [0], [0], [1], [0, 0, 1, 1], [], []>} : vector<16x32xf32>, vector<32x96xf32>, vector<16x96xf32> -> vector<16x96xf32>
    %3 = vector.extract_strided_slice %2 {offsets = [0, 0], sizes = [16, 8], strides = [1, 1]} : vector<16x96xf32> to vector<16x8xf32>
    %4 = vector.shape_cast %3 : vector<16x8xf32> to vector<1x16x8xf32>
    %5 = vector.extract_strided_slice %2 {offsets = [0, 32], sizes = [16, 8], strides = [1, 1]} : vector<16x96xf32> to vector<16x8xf32>
    %6 = vector.shape_cast %5 : vector<16x8xf32> to vector<1x16x8xf32>
    %7 = vector.extract_strided_slice %2 {offsets = [0, 64], sizes = [16, 8], strides = [1, 1]} : vector<16x96xf32> to vector<16x8xf32>
    %8 = vector.shape_cast %7 : vector<16x8xf32> to vector<1x16x8xf32>
    "tpu.trace_start"() <{level = 10 : i32, message = "bqd,bkd->bqk"}> : () -> ()
    %cst_3 = arith.constant dense<0.000000e+00> : vector<1x16x16xf32>
    %9 = tpu.matmul %4, %6, %cst_3 {dimension_numbers = #tpu.dot_dimension_numbers<[2], [2], [1], [1], [0, 0, 0, 1, 1, 1], [0], [0]>} : vector<1x16x8xf32>, vector<1x16x8xf32>, vector<1x16x16xf32> -> vector<1x16x16xf32>
    "tpu.trace_stop"() : () -> ()
    %c0_4 = arith.constant 0 : index
    %c0_5 = arith.constant 0 : index
    %c0_6 = arith.constant 0 : index
    %10 = vector.load %arg3[%c0_4, %c0_5, %c0_6] : memref<4x16x16xf32, #tpu.memory_space<vmem>>, vector<1x16x16xf32>
    %11 = vector.shape_cast %10 : vector<1x16x16xf32> to vector<16x16xf32>
    %12 = vector.shape_cast %11 : vector<16x16xf32> to vector<1x16x16xf32>
    %13 = arith.addf %9, %12 : vector<1x16x16xf32>
    %cst_7 = arith.constant dense<0xFF800000> : vector<1x16xf32>
    %14 = vector.multi_reduction <maximumf>, %13, %cst_7 [2] : vector<1x16x16xf32> to vector<1x16xf32>
    %15 = vector.shape_cast %14 : vector<1x16xf32> to vector<1x16x1xf32>
    %16 = vector.broadcast %15 : vector<1x16x1xf32> to vector<1x16x16xf32>
    %17 = arith.subf %13, %16 : vector<1x16x16xf32>
    %18 = math.exp %17 : vector<1x16x16xf32>
    %cst_8 = arith.constant dense<0.000000e+00> : vector<1x16xf32>
    %19 = vector.multi_reduction <add>, %18, %cst_8 [2] : vector<1x16x16xf32> to vector<1x16xf32>
    %20 = vector.shape_cast %19 : vector<1x16xf32> to vector<1x16x1xf32>
    %21 = tpu.reciprocal %20 : vector<1x16x1xf32> -> vector<1x16x1xf32>
    %22 = vector.broadcast %21 : vector<1x16x1xf32> to vector<1x16x16xf32>
    %23 = arith.mulf %18, %22 : vector<1x16x16xf32>
    "tpu.trace_start"() <{level = 10 : i32, message = "bqk,bkd->bqd"}> : () -> ()
    %cst_9 = arith.constant dense<0.000000e+00> : vector<1x16x8xf32>
    %24 = tpu.matmul %23, %8, %cst_9 {dimension_numbers = #tpu.dot_dimension_numbers<[2], [1], [1], [2], [0, 0, 0, 1, 1, 2], [0], [0]>} : vector<1x16x16xf32>, vector<1x16x8xf32>, vector<1x16x8xf32> -> vector<1x16x8xf32>
    "tpu.trace_stop"() : () -> ()
    %25 = vector.shape_cast %24 : vector<1x16x8xf32> to vector<16x8xf32>
    %26 = vector.extract_strided_slice %2 {offsets = [0, 8], sizes = [16, 8], strides = [1, 1]} : vector<16x96xf32> to vector<16x8xf32>
    %27 = vector.shape_cast %26 : vector<16x8xf32> to vector<1x16x8xf32>
    %28 = vector.extract_strided_slice %2 {offsets = [0, 40], sizes = [16, 8], strides = [1, 1]} : vector<16x96xf32> to vector<16x8xf32>
    %29 = vector.shape_cast %28 : vector<16x8xf32> to vector<1x16x8xf32>
    %30 = vector.extract_strided_slice %2 {offsets = [0, 72], sizes = [16, 8], strides = [1, 1]} : vector<16x96xf32> to vector<16x8xf32>
    %31 = vector.shape_cast %30 : vector<16x8xf32> to vector<1x16x8xf32>
    "tpu.trace_start"() <{level = 10 : i32, message = "bqd,bkd->bqk"}> : () -> ()
    %cst_10 = arith.constant dense<0.000000e+00> : vector<1x16x16xf32>
    %32 = tpu.matmul %27, %29, %cst_10 {dimension_numbers = #tpu.dot_dimension_numbers<[2], [2], [1], [1], [0, 0, 0, 1, 1, 1], [0], [0]>} : vector<1x16x8xf32>, vector<1x16x8xf32>, vector<1x16x16xf32> -> vector<1x16x16xf32>
    "tpu.trace_stop"() : () -> ()
    %c1 = arith.constant 1 : index
    %c0_11 = arith.constant 0 : index
    %c0_12 = arith.constant 0 : index
    %33 = vector.load %arg3[%c1, %c0_11, %c0_12] : memref<4x16x16xf32, #tpu.memory_space<vmem>>, vector<1x16x16xf32>
    %34 = vector.shape_cast %33 : vector<1x16x16xf32> to vector<16x16xf32>
    %35 = vector.shape_cast %34 : vector<16x16xf32> to vector<1x16x16xf32>
    %36 = arith.addf %32, %35 : vector<1x16x16xf32>
    %cst_13 = arith.constant dense<0xFF800000> : vector<1x16xf32>
    %37 = vector.multi_reduction <maximumf>, %36, %cst_13 [2] : vector<1x16x16xf32> to vector<1x16xf32>
    %38 = vector.shape_cast %37 : vector<1x16xf32> to vector<1x16x1xf32>
    %39 = vector.broadcast %38 : vector<1x16x1xf32> to vector<1x16x16xf32>
    %40 = arith.subf %36, %39 : vector<1x16x16xf32>
    %41 = math.exp %40 : vector<1x16x16xf32>
    %cst_14 = arith.constant dense<0.000000e+00> : vector<1x16xf32>
    %42 = vector.multi_reduction <add>, %41, %cst_14 [2] : vector<1x16x16xf32> to vector<1x16xf32>
    %43 = vector.shape_cast %42 : vector<1x16xf32> to vector<1x16x1xf32>
    %44 = tpu.reciprocal %43 : vector<1x16x1xf32> -> vector<1x16x1xf32>
    %45 = vector.broadcast %44 : vector<1x16x1xf32> to vector<1x16x16xf32>
    %46 = arith.mulf %41, %45 : vector<1x16x16xf32>
    "tpu.trace_start"() <{level = 10 : i32, message = "bqk,bkd->bqd"}> : () -> ()
    %cst_15 = arith.constant dense<0.000000e+00> : vector<1x16x8xf32>
    %47 = tpu.matmul %46, %31, %cst_15 {dimension_numbers = #tpu.dot_dimension_numbers<[2], [1], [1], [2], [0, 0, 0, 1, 1, 2], [0], [0]>} : vector<1x16x16xf32>, vector<1x16x8xf32>, vector<1x16x8xf32> -> vector<1x16x8xf32>
    "tpu.trace_stop"() : () -> ()
    %48 = vector.shape_cast %47 : vector<1x16x8xf32> to vector<16x8xf32>
    %49 = vector.extract_strided_slice %2 {offsets = [0, 16], sizes = [16, 8], strides = [1, 1]} : vector<16x96xf32> to vector<16x8xf32>
    %50 = vector.shape_cast %49 : vector<16x8xf32> to vector<1x16x8xf32>
    %51 = vector.extract_strided_slice %2 {offsets = [0, 48], sizes = [16, 8], strides = [1, 1]} : vector<16x96xf32> to vector<16x8xf32>
    %52 = vector.shape_cast %51 : vector<16x8xf32> to vector<1x16x8xf32>
    %53 = vector.extract_strided_slice %2 {offsets = [0, 80], sizes = [16, 8], strides = [1, 1]} : vector<16x96xf32> to vector<16x8xf32>
    %54 = vector.shape_cast %53 : vector<16x8xf32> to vector<1x16x8xf32>
    "tpu.trace_start"() <{level = 10 : i32, message = "bqd,bkd->bqk"}> : () -> ()
    %cst_16 = arith.constant dense<0.000000e+00> : vector<1x16x16xf32>
    %55 = tpu.matmul %50, %52, %cst_16 {dimension_numbers = #tpu.dot_dimension_numbers<[2], [2], [1], [1], [0, 0, 0, 1, 1, 1], [0], [0]>} : vector<1x16x8xf32>, vector<1x16x8xf32>, vector<1x16x16xf32> -> vector<1x16x16xf32>
    "tpu.trace_stop"() : () -> ()
    %c2 = arith.constant 2 : index
    %c0_17 = arith.constant 0 : index
    %c0_18 = arith.constant 0 : index
    %56 = vector.load %arg3[%c2, %c0_17, %c0_18] : memref<4x16x16xf32, #tpu.memory_space<vmem>>, vector<1x16x16xf32>
    %57 = vector.shape_cast %56 : vector<1x16x16xf32> to vector<16x16xf32>
    %58 = vector.shape_cast %57 : vector<16x16xf32> to vector<1x16x16xf32>
    %59 = arith.addf %55, %58 : vector<1x16x16xf32>
    %cst_19 = arith.constant dense<0xFF800000> : vector<1x16xf32>
    %60 = vector.multi_reduction <maximumf>, %59, %cst_19 [2] : vector<1x16x16xf32> to vector<1x16xf32>
    %61 = vector.shape_cast %60 : vector<1x16xf32> to vector<1x16x1xf32>
    %62 = vector.broadcast %61 : vector<1x16x1xf32> to vector<1x16x16xf32>
    %63 = arith.subf %59, %62 : vector<1x16x16xf32>
    %64 = math.exp %63 : vector<1x16x16xf32>
    %cst_20 = arith.constant dense<0.000000e+00> : vector<1x16xf32>
    %65 = vector.multi_reduction <add>, %64, %cst_20 [2] : vector<1x16x16xf32> to vector<1x16xf32>
    %66 = vector.shape_cast %65 : vector<1x16xf32> to vector<1x16x1xf32>
    %67 = tpu.reciprocal %66 : vector<1x16x1xf32> -> vector<1x16x1xf32>
    %68 = vector.broadcast %67 : vector<1x16x1xf32> to vector<1x16x16xf32>
    %69 = arith.mulf %64, %68 : vector<1x16x16xf32>
    "tpu.trace_start"() <{level = 10 : i32, message = "bqk,bkd->bqd"}> : () -> ()
    %cst_21 = arith.constant dense<0.000000e+00> : vector<1x16x8xf32>
    %70 = tpu.matmul %69, %54, %cst_21 {dimension_numbers = #tpu.dot_dimension_numbers<[2], [1], [1], [2], [0, 0, 0, 1, 1, 2], [0], [0]>} : vector<1x16x16xf32>, vector<1x16x8xf32>, vector<1x16x8xf32> -> vector<1x16x8xf32>
    "tpu.trace_stop"() : () -> ()
    %71 = vector.shape_cast %70 : vector<1x16x8xf32> to vector<16x8xf32>
    %72 = vector.extract_strided_slice %2 {offsets = [0, 24], sizes = [16, 8], strides = [1, 1]} : vector<16x96xf32> to vector<16x8xf32>
    %73 = vector.shape_cast %72 : vector<16x8xf32> to vector<1x16x8xf32>
    %74 = vector.extract_strided_slice %2 {offsets = [0, 56], sizes = [16, 8], strides = [1, 1]} : vector<16x96xf32> to vector<16x8xf32>
    %75 = vector.shape_cast %74 : vector<16x8xf32> to vector<1x16x8xf32>
    %76 = vector.extract_strided_slice %2 {offsets = [0, 88], sizes = [16, 8], strides = [1, 1]} : vector<16x96xf32> to vector<16x8xf32>
    %77 = vector.shape_cast %76 : vector<16x8xf32> to vector<1x16x8xf32>
    "tpu.trace_start"() <{level = 10 : i32, message = "bqd,bkd->bqk"}> : () -> ()
    %cst_22 = arith.constant dense<0.000000e+00> : vector<1x16x16xf32>
    %78 = tpu.matmul %73, %75, %cst_22 {dimension_numbers = #tpu.dot_dimension_numbers<[2], [2], [1], [1], [0, 0, 0, 1, 1, 1], [0], [0]>} : vector<1x16x8xf32>, vector<1x16x8xf32>, vector<1x16x16xf32> -> vector<1x16x16xf32>
    "tpu.trace_stop"() : () -> ()
    %c3 = arith.constant 3 : index
    %c0_23 = arith.constant 0 : index
    %c0_24 = arith.constant 0 : index
    %79 = vector.load %arg3[%c3, %c0_23, %c0_24] : memref<4x16x16xf32, #tpu.memory_space<vmem>>, vector<1x16x16xf32>
    %80 = vector.shape_cast %79 : vector<1x16x16xf32> to vector<16x16xf32>
    %81 = vector.shape_cast %80 : vector<16x16xf32> to vector<1x16x16xf32>
    %82 = arith.addf %78, %81 : vector<1x16x16xf32>
    %cst_25 = arith.constant dense<0xFF800000> : vector<1x16xf32>
    %83 = vector.multi_reduction <maximumf>, %82, %cst_25 [2] : vector<1x16x16xf32> to vector<1x16xf32>
    %84 = vector.shape_cast %83 : vector<1x16xf32> to vector<1x16x1xf32>
    %85 = vector.broadcast %84 : vector<1x16x1xf32> to vector<1x16x16xf32>
    %86 = arith.subf %82, %85 : vector<1x16x16xf32>
    %87 = math.exp %86 : vector<1x16x16xf32>
    %cst_26 = arith.constant dense<0.000000e+00> : vector<1x16xf32>
    %88 = vector.multi_reduction <add>, %87, %cst_26 [2] : vector<1x16x16xf32> to vector<1x16xf32>
    %89 = vector.shape_cast %88 : vector<1x16xf32> to vector<1x16x1xf32>
    %90 = tpu.reciprocal %89 : vector<1x16x1xf32> -> vector<1x16x1xf32>
    %91 = vector.broadcast %90 : vector<1x16x1xf32> to vector<1x16x16xf32>
    %92 = arith.mulf %87, %91 : vector<1x16x16xf32>
    "tpu.trace_start"() <{level = 10 : i32, message = "bqk,bkd->bqd"}> : () -> ()
    %cst_27 = arith.constant dense<0.000000e+00> : vector<1x16x8xf32>
    %93 = tpu.matmul %92, %77, %cst_27 {dimension_numbers = #tpu.dot_dimension_numbers<[2], [1], [1], [2], [0, 0, 0, 1, 1, 2], [0], [0]>} : vector<1x16x16xf32>, vector<1x16x8xf32>, vector<1x16x8xf32> -> vector<1x16x8xf32>
    "tpu.trace_stop"() : () -> ()
    %94 = vector.shape_cast %93 : vector<1x16x8xf32> to vector<16x8xf32>
    %95 = tpu.concatenate %25, %48, %71, %94 in 1 : vector<16x8xf32>, vector<16x8xf32>, vector<16x8xf32>, vector<16x8xf32> -> vector<16x32xf32>
    %c0_28 = arith.constant 0 : index
    %c0_29 = arith.constant 0 : index
    %96 = vector.load %arg4[%c0_28, %c0_29] : memref<32x32xf32, #tpu.memory_space<vmem>>, vector<32x32xf32>
    %cst_30 = arith.constant dense<0.000000e+00> : vector<16x32xf32>
    %97 = tpu.matmul %95, %96, %cst_30 {dimension_numbers = #tpu.dot_dimension_numbers<[1], [0], [0], [1], [0, 0, 1, 1], [], []>} : vector<16x32xf32>, vector<32x32xf32>, vector<16x32xf32> -> vector<16x32xf32>
    %c0_31 = arith.constant 0 : index
    %c0_32 = arith.constant 0 : index
    %98 = vector.load %arg5[%c0_31, %c0_32] : memref<1x32xf32, #tpu.memory_space<vmem>>, vector<1x32xf32>
    %99 = vector.broadcast %98 : vector<1x32xf32> to vector<16x32xf32>
    %100 = arith.addf %97, %99 : vector<16x32xf32>
    %c0_33 = arith.constant 0 : index
    %c0_34 = arith.constant 0 : index
    %101 = vector.load %arg6[%c0_33, %c0_34] : memref<16x32xf32, #tpu.memory_space<vmem>>, vector<16x32xf32>
    tpu.vector_store %arg6[%c0_33, %c0_34], %100 {strides = array<i32>} : memref<16x32xf32, #tpu.memory_space<vmem>>, vector<16x32xf32>,
    return
  }
  func.func @transform_0(%arg0: i32) -> (i32, i32) {
    %c0_i32 = arith.constant 0 : i32
    %c0_i32_0 = arith.constant 0 : i32
    return %arg0, %c0_i32 : i32, i32
  }
  func.func @transform_1(%arg0: i32) -> (i32, i32) {
    %c0_i32 = arith.constant 0 : i32
    %c0_i32_0 = arith.constant 0 : i32
    %c0_i32_1 = arith.constant 0 : i32
    return %c0_i32, %c0_i32_0 : i32, i32
  }
  func.func @transform_2(%arg0: i32) -> (i32, i32, i32) {
    %c0_i32 = arith.constant 0 : i32
    %c0_i32_0 = arith.constant 0 : i32
    %c0_i32_1 = arith.constant 0 : i32
    %c0_i32_2 = arith.constant 0 : i32
    return %c0_i32, %c0_i32_0, %c0_i32_1 : i32, i32, i32
  }
  func.func @transform_3(%arg0: i32) -> (i32, i32) {
    %c0_i32 = arith.constant 0 : i32
    %c0_i32_0 = arith.constant 0 : i32
    %c0_i32_1 = arith.constant 0 : i32
    return %c0_i32, %c0_i32_0 : i32, i32
  }
  func.func @transform_4(%arg0: i32) -> (i32, i32) {
    %c0_i32 = arith.constant 0 : i32
    %c0_i32_0 = arith.constant 0 : i32
    %c0_i32_1 = arith.constant 0 : i32
    return %c0_i32, %c0_i32_0 : i32, i32
  }
  func.func @transform_5(%arg0: i32) -> (i32, i32) {
    %c0_i32 = arith.constant 0 : i32
    %c0_i32_0 = arith.constant 0 : i32
    return %arg0, %c0_i32 : i32, i32
  }
}

</mosaic_0001>

<bundles_post_ra>
// kernel: tpu_custom_call.1
= control target key start
LH: loop header
LB: loop body
LE: loop exit
PB: predicated region body
PF: predicated region fallthrough
CT: control target
= control target key end

     0   :  { %10 = vsyncpa [#allocation3], 0  ;;  %s2447_s0 = inlined_call_operand.hbm [shape: f32[32,32], index: 0, kind: input, shape index: {}]   ;;  %s2448_s1 = inlined_call_operand.hbm [shape: f32[32,96], index: 1, kind: input, shape index: {}]   ;;  %s2449_s2 = inlined_call_operand.hbm [shape: f32[4,16,16], index: 2, kind: input, shape index: {}]   ;;  %s2450_s3 = inlined_call_operand.hbm [shape: f32[32,32], index: 3, kind: input, shape index: {}]   ;;  %s2451_s4 = inlined_call_operand.vmem [shape: f32[1,32], index: 4, kind: input, shape index: {}]   ;;  %s2452_s5 = inlined_call_operand.hbm [shape: f32[32,32], index: 5, kind: output, shape index: {}]  }
   0x1   :  { %12 = vsyncpa [#allocation3 + $0x1], 0 }
   0x2   :  { %13 = vsyncpa [#allocation6], 0 }
   0x3   :  { %14 = vsyncpa [#allocation9], 0 }
   0x4   :  { %15 = vsyncpa [#allocation4], 0 }
   0x5   :  { %17 = vsyncpa [#allocation4 + $0x1], 0  ;;  %s2066_s18 = smov 0   ;;  %s2068_s19 = smov 0  }
   0x6   :  { %s2070_s20 = smov 0   ;;  %s2072_s21 = smov 0  }
   0x7 LB: > { %s2087_s22 = sadd.s32 4294967295, %s2012_s21   ;;  %s1429_s23 = sadd.s32 4294967294, %s2012_s21   ;;  %s2012_s21 = sphi %s2072_s21, %s2477_s21   ;;  %s2008_s20 = sphi %s2070_s20, %s2476_s20   ;;  %s2004_s19 = sphi %s2068_s19, %s2475_s19   ;;  %s2000_s18 = sphi %s2066_s18, %s2474_s18  }
   0x8   : > { %p43_p0 = scmp.ne.s32.totalorder %s2004_s19, %s2000_s18  ;;  %p2453_p1 = scmp.eq.s32.totalorder %s2087_s22, 0 }
   0x9   : > { %p157_p3 = scmp.eq.s32.totalorder %s1429_s23, 1  ;;  %p1430_p5 = scmp.ge.s32.totalorder %s2012_s21, 1 }
   0xa   : > { %p2096_p4 = por %p2453_p1, %p43_p0  ;;  %p164_p7 = scmp.lt.s32.totalorder %s2012_s21, 3 }
   0xb   : > { %p2101_p6 = por %p157_p3, %p43_p0  ;;  %s2014_s27 = smov [#allocation5]  }
   0xc   : > { %s2456_s24 = scalar_select %p2096_p4, 1, 0 }
   0xd   : > { %s2457_s25 = scalar_select %p2101_p6, 1, 0 }
   0xe   : > { %p2106_p8 = pnand %p1430_p5, %p164_p7  ;;  %s176_s28 = sshll.u32 %s2014_s27, 4  ;;  %s2110_s28 = int_to_ptr.vmem [resolvable:$true] %s176_s28 }
   0xf   : > { %s2015_s30 = smov [#allocation7]   ;;  %s2016_s7 = smov [#allocation8]  }
  0x10   : > { %s2458_s26 = scalar_select %p2106_p8, 1, 0 }
  0x11   : > { %p1674_p9 = pneg %p2106_p8  ;;  %s189_s6 = sshll.u32 %s2015_s30, 4  ;;  %s2121_s6 = int_to_ptr.vmem [resolvable:$true] %s189_s6 }
  0x12   : > { %s2123_s8 = sshll.u32 %s2016_s7, 4  ;;  %s1824_s11 = scalar_lea.hbm %s2448_s1, 512  ;;  %s203_s8 = int_to_ptr.vmem [resolvable:$true] %s2123_s8 }
  0x13   : > { %p2117_p11 = pnand %p1674_p9, %p2453_p1  ;;  %p1825_p12 = scmp.ne.s32.totalorder %s2448_s1, %s1824_s11 }
  0x14   : > { %p1831_p5 = scmp.lt.u32.totalorder %s1824_s11, %s2448_s1 }
  0x15   : > { %p2133_p13 = pneg %p2117_p11 }
  0x17   : > { %p1827_p0 = pnand %p2133_p13, %p1825_p12 }
  0x19   : > { %p1828_p3 = pneg %p1827_p0 }
  0x1b   : > { %p1833_p7 = pnand %p1831_p5, %p1828_p3 }
  0x1d   : > { %1836 = shalt.err (!%p1833_p7)
}
  0x1e   : > { %s1837_s17 = scalar_lea.vmem %s2110_s28, 512  ;;  %p1845_p2 = scmp.lt.s32.totalorder %s2110_s28, %s2110_s28 }
  0x1f   : > { %p1838_p9 = scmp.ne.s32.totalorder %s2110_s28, %s1837_s17  ;;  %p1846_p6 = scmp.lt.s32.totalorder %s1837_s17, %s1837_s17 }
  0x21   : > { %p1840_p10 = pnand %p1838_p9, %p2133_p13  ;;  %p1847_p12 = por %p1846_p6, %p1845_p2 }
  0x23   : > { %p1841_p1 = pneg %p1840_p10 }
  0x25   : > { %p1848_p0 = pnand %p1847_p12, %p1841_p1 }
  0x27   : > { %1851 = shalt.err (!%p1848_p0)
}
  0x28   : > { %s2017_s23 = smov 128   ;;  %s2018_s27 = smov 8  }
  0x29   : > { %1677 = dma.hbm_to_vmem [thread:$0]  (!%p2117_p11), %s2448_s1, 512, %s2110_s28, [#allocation6], %s2017_s23, %s2017_s23, %s2018_s27  }
  0x2a   : > { %s1852_s11 = scalar_lea.hbm %s2449_s2, 1024 }
  0x2b   : > { %p1853_p1 = scmp.ne.s32.totalorder %s2449_s2, %s1852_s11  ;;  %p1859_p10 = scmp.lt.u32.totalorder %s1852_s11, %s2449_s2 }
  0x2d   : > { %p1855_p2 = pnand %p1853_p1, %p2133_p13 }
  0x2f   : > { %p1856_p6 = pneg %p1855_p2 }
  0x31   : > { %p1861_p3 = pnand %p1859_p10, %p1856_p6 }
  0x33   : > { %1864 = shalt.err (!%p1861_p3)
}
  0x34   : > { %s1865_s28 = scalar_lea.vmem %s2121_s6, 1024  ;;  %p1873_p12 = scmp.lt.s32.totalorder %s2121_s6, %s2121_s6 }
  0x35   : > { %p1866_p5 = scmp.ne.s32.totalorder %s2121_s6, %s1865_s28  ;;  %p1874_p0 = scmp.lt.s32.totalorder %s1865_s28, %s1865_s28 }
  0x37   : > { %p1868_p7 = pnand %p1866_p5, %p2133_p13  ;;  %p1875_p1 = por %p1874_p0, %p1873_p12 }
  0x39   : > { %p1869_p9 = pneg %p1868_p7 }
  0x3b   : > { %p1876_p2 = pnand %p1875_p1, %p1869_p9 }
  0x3d   : > { %1879 = shalt.err (!%p1876_p2)
}
  0x3e   : > { %1680 = dma.hbm_to_vmem [thread:$0]  (!%p2117_p11), %s2449_s2, 1024, %s2121_s6, [#allocation6], %s2017_s23, %s2017_s23, %s2018_s27  }
  0x3f   : > { %s1880_s10 = scalar_lea.hbm %s2450_s3, 512 }
  0x40   : > { %p1881_p6 = scmp.ne.s32.totalorder %s2450_s3, %s1880_s10  ;;  %p1887_p5 = scmp.lt.u32.totalorder %s1880_s10, %s2450_s3 }
  0x42   : > { %p1883_p10 = pnand %p1881_p6, %p2133_p13 }
  0x44   : > { %p1884_p3 = pneg %p1883_p10 }
  0x46   : > { %p1889_p7 = pnand %p1887_p5, %p1884_p3 }
  0x48   : > { %1892 = shalt.err (!%p1889_p7)
}
  0x49   : > { %s1893_s16 = scalar_lea.vmem %s203_s8, 512  ;;  %p1901_p1 = scmp.lt.s32.totalorder %s203_s8, %s203_s8 }
  0x4a   : > { %p1894_p9 = scmp.ne.s32.totalorder %s203_s8, %s1893_s16  ;;  %p1902_p2 = scmp.lt.s32.totalorder %s1893_s16, %s1893_s16 }
  0x4c   : > { %p1896_p12 = pnand %p1894_p9, %p2133_p13  ;;  %p1903_p4 = por %p1902_p2, %p1901_p1 }
  0x4e   : > { %p1897_p0 = pneg %p1896_p12 }
  0x50   : > { %p1904_p8 = pnand %p1903_p4, %p1897_p0 }
  0x52   : > { %1907 = shalt.err (!%p1904_p8)
}
  0x53   : > { %1683 = dma.hbm_to_vmem [thread:$0]  (!%p2117_p11), %s2450_s3, 512, %s203_s8, [#allocation9], %s2017_s23, %s2017_s23, %s2018_s27  }
  0x54   : > { %s2206_s14 = sadd.s32 1, %s2012_s21   ;;  %s30_s17 = sadd.s32 1, %s2008_s20 }
  0x55   : > { %s27_s29 = ssub.s32 %s2012_s21, %s2206_s14  ;;  %p37_p8 = scmp.ne.s32.totalorder %s2008_s20, %s2004_s19 }
  0x56   : > { %p28_p4 = scmp.eq.s32.totalorder %s27_s29, 0  ;;  %p38_p13 = scmp.eq.s32.totalorder %s2012_s21, 0 }
  0x57   : > { %p1695_p6 = scmp.lt.s32.totalorder %s2012_s21, 2  ;;  %p2461_p3 = scmp.eq.s32.totalorder %s2087_s22, 1 }
  0x58   : > { %s2216_s30 = scalar_select %p28_p4, %s2008_s20, %s30_s17  }
  0x59   : > { %p39_p10 = por %p38_p13, %p37_p8  ;;  %p2220_p5 = por %p2461_p3, %p37_p8 }
  0x5a   : > { %s219_s9 = sand.u32 1, %s2008_s20   ;;  %s1478_s10 = sshll.u32 %s2012_s21, 8 }
  0x5b   : > { %s1435_s8 = sshll.u32 %s219_s9, 4  ;;  %s2229_s13 = scalar_lea.hbm %s2447_s0, %s1478_s10 }
  0x5c   : > { %s223_s15 = scalar_lea.vmem [#allocation2], %s1435_s8  ;;  %p2231_p11 = pnand %p1695_p6, %p39_p10 }
  0x5d   : > { %s230_s16 = sshll.u32 %s223_s15, 4  ;;  %s2237_s28 = scalar_lea.sflag [#allocation3], %s219_s9  ;;  %s2235_s16 = int_to_ptr.vmem [resolvable:$true] %s230_s16 }
  0x5e   : > { %s1908_s29 = scalar_lea.hbm %s2229_s13, 256  ;;  %p1910_p9 = pneg %p2231_p11 }
  0x5f   : > { %p1909_p7 = scmp.ne.s32.totalorder %s2229_s13, %s1908_s29  ;;  %s1913_s8 = scalar_lea.hbm %s2447_s0, 512 }
  0x60   : > { %p1914_p1 = scmp.lt.u32.totalorder %s2229_s13, %s2447_s0  ;;  %p1915_p2 = scmp.lt.u32.totalorder %s1913_s8, %s1908_s29 }
  0x61   : > { %p1911_p12 = pnand %p1910_p9, %p1909_p7  ;;  %p1917_p8 = scmp.lt.u32.totalorder %s1908_s29, %s2229_s13 }
  0x62   : > { %p1916_p4 = por %p1915_p2, %p1914_p1 }
  0x63   : > { %p1912_p0 = pneg %p1911_p12 }
  0x64   : > { %p1918_p13 = por %p1917_p8, %p1916_p4 }
  0x66   : > { %p1919_p6 = pnand %p1918_p13, %p1912_p0 }
  0x68   : > { %1922 = shalt.err (!%p1919_p6)
}
  0x69   : > { %s1923_s9 = scalar_lea.vmem %s2235_s16, 256  ;;  %s2019_s15 = smov [#allocation2]  }
  0x6a   : > { %p1924_p10 = scmp.ne.s32.totalorder %s2235_s16, %s1923_s9  ;;  %s1928_s17 = sshll.u32 %s2019_s15, 4  ;;  %s1929_s17 = int_to_ptr.vmem [resolvable:$false] %s1928_s17 }
  0x6b   : > { %s1930_s10 = scalar_lea.vmem %s1929_s17, 512  ;;  %p1931_p12 = scmp.lt.s32.totalorder %s2235_s16, %s1929_s17 }
  0x6c   : > { %p1926_p3 = pnand %p1924_p10, %p1910_p9  ;;  %p1932_p1 = scmp.lt.s32.totalorder %s1930_s10, %s1923_s9 }
  0x6e   : > { %p1927_p7 = pneg %p1926_p3  ;;  %p1933_p2 = por %p1932_p1, %p1931_p12 }
  0x70   : > { %p1934_p4 = pnand %p1933_p2, %p1927_p7 }
  0x72   : > { %1937 = shalt.err (!%p1934_p4)
}
  0x73   : > { %1687 = dma.hbm_to_vmem [thread:$0]  (!%p2231_p11), %s2229_s13, 256, %s2235_s16, %s2237_s28, %s2017_s23, %s2017_s23, %s2018_s27  }
  0x74   : > { %p2464_p9 = scmp.ne.s32.totalorder %s2458_s26, 0 }
  0x75   : > { %s2271_s29 = sand.u32 (!%p2464_p9), 1, %s2004_s19   ;;  %p2465_p0 = scmp.ne.s32.totalorder (!%p2464_p9), %s2456_s24, 0 }
  0x76   : > { %242 = sbr.rel (%p2464_p9) target bundleno = 3199 (0xc7f), region = 40  ;;  %s1439_s8 = sshll.u32 (!%p2464_p9), %s2271_s29, 4 }
  0x77   : > { %s245_s11 = scalar_lea.sflag (!%p2464_p9), [#allocation3], %s2271_s29  ;;  %s248_s6 = scalar_lea.vmem (!%p2464_p9), [#allocation2], %s1439_s8 }
  0x7d   : > { %1983 = dma.done.wait (%p2465_p0), %s245_s11, 256  }
  0x7e   : > { %1985 = vsyncadd (%p2465_p0), %s245_s11, 4294967040  ;;  %p2466_p11 = scmp.eq.s32.totalorder %s2087_s22, 0 }
  0x80   : > { %1987 = dma.done.wait (%p2466_p11), [#allocation6], 1536   ;;  %p2467_p8 = pmov %p2466_p11 }
  0x82   : > { %1989 = vsyncadd (%p2467_p8), [#allocation6], 4294965760  ;;  %p2468_p13 = pmov %p2467_p8 }
  0x83   : > { %p2469_p6 = pmov %p2467_p8 }
  0x84   : > { %1991 = dma.done.wait (%p2468_p13), [#allocation9], 512  }
  0x85   : > { %1993 = vsyncadd (%p2469_p6), [#allocation9], 4294966784  ;;  %vm295_vm0 = vcmask 261120   ;;  %v291_v0 = vld [vmem:[#allocation5] sm:$0xff]  ;;  %v292_v1 = vld [vmem:[#allocation5 + $0x8] sm:$0xff]  ;;  %vm385_vm1 = vcmask 64512  }
  0x86   : > { %v293_v2 = vld [vmem:[#allocation5 + $0x10] sm:$0xff]  ;;  %v1602_v3 = vpack.c.bf16 %v292_v1, %v291_v0  ;;  %v294_v4 = vld [vmem:[#allocation5 + $0x18] sm:$0xff]  ;;  %s2020_s24 = smov 96   ;;  %vm2304_vm2 = vmpackc.low %vm385_vm1, %vm385_vm1  ;;  %vm469_vm3 = vcmask 130048   ;;  %s2021_s26 = smov 64   ;;  %vm1216_vm4 = vcmask 195584  }
  0x87   : > { %v289_v5 = vld [vmem:[%s248_s6] sm:$0xff]  ;;  %v1606_v6 = vpack.c.bf16 %v294_v4, %v293_v2  ;;  %v290_v7 = vld [vmem:[%s248_s6 + $0x8] sm:$0xff]  ;;  %s2022_s23 = smov 88   ;;  %s2023_s27 = smov 120  }
  0x88   : > { %1532 = vmatprep.mubr.msk.f32.mxu0 %vm295_vm0, %v289_v5  ;;  %1603 = vmatprep.subr.bf16.mxu0 %v1602_v3  ;;  %v378_v16 = vld [vmem:[#allocation7 + $0x8] sm:$0xff]  ;;  %v377_v17 = vld [vmem:[#allocation7] sm:$0xff]  ;;  %v581_v52 = vld [vmem:[#allocation7 + $0x18] sm:$0xff]  ;;  %s2024_s13 = smov 56   ;;  %s2025_s16 = smov 80  }
  0x89   : > { %1605 = vmatpush3.bf16.msra.mxu0 %v1602_v3  ;;  %v580_v53 = vld [vmem:[#allocation7 + $0x10] sm:$0xff]  ;;  %s2026_s28 = smov 112   ;;  %s2027_s12 = smov 72  }
  0x8a   : > { %1607 = vmatprep.subr.bf16.mxu0 %v1606_v6  ;;  %s2028_s9 = smov 104   ;;  %s2029_s15 = smov 48  }
  0x8b   : > { %s2030_s17 = smov 8   ;;  %s2031_s10 = smov 40  }
  0x8c   : > { %s2032_s11 = smov 16   ;;  %s2033_s6 = smov 24  }
  0x8d   : > { %1609 = vmatpush3.bf16.msra.mxu0 %v1606_v6 }
  0x90   : > { %1533 = vmatmul.mubr.msk.f32.vlgmr.msra.gmra.mrb[0].mxu0 %vm295_vm0, %v290_v7 }
 0x163   : > { %v2291_v8 = vpop.f32.mrb[0].mxu0 }
 0x164   : > { %v2293_v9 = vpop.f32.mrb[1].mxu0 }
 0x165   : > { %1539 = vmatprep.mubr.msk.f32.mxu1 %vm385_vm1, %v2293_v9  ;;  %v2299_v10 = vpack.i.bf16 %v2291_v8, %v2293_v9 }
 0x167   : > { %1753 = vrot.lane.b32.xlu0 %v2299_v10, %s2020_s24 }
 0x1d9   : > { %v1754_v11 = vpop.permute.xlu0 %1753 }
 0x1da   : > { %v1756_v12 = vunpack.i.h.bf16 %v1754_v11  ;;  %v1755_v13 = vunpack.i.l.bf16 %v1754_v11 }
 0x1dc   : > { %v1610_v15 = vpack.c.bf16 %v1756_v12, %v1755_v13 }
 0x1de   : > { %1612 = vmatprep.subr.msk.bf16.mxu1 %vm2304_vm2, %v1610_v15 }
 0x1df   : > { %1615 = vmatpush3.bf16.xpose.msk.msra.mxu1 %vm2304_vm2, %v1610_v15 }
 0x1e6   : > { %1540 = vmatmul.mubr.msk.f32.vlgmr.msra.gmra.mrb[0].mxu1 %vm385_vm1, %v2291_v8 }
 0x2b9   : > { %v1541_v18 = vpop.f32.mrb[0].mxu1 }
 0x2ba   : > { %v466_v19 = vadd.f32 %v1541_v18, %v378_v16  ;;  %v460_v20 = vpop.f32.mrb[1].mxu1 }
 0x2bb   : > { %v461_v21 = vadd.f32 %v460_v20, %v377_v17 }
 0x2bc   : > { %v473_v22 = vsel %vm469_vm3, %v466_v19, -inf }
 0x2bd   : > { %474 = vmax.xlane.f32.xlu1 %v473_v22  ;;  %v470_v23 = vsel %vm469_vm3, %v461_v21, -inf }
 0x2be   : > { %471 = vmax.xlane.f32.xlu0 %v470_v23 }
 0x2ce   : > { %1758 = vrot.lane.b32.xlu1 %v2299_v10, %s2021_s26 }
 0x2d2   : > { %1763 = vrot.lane.b32.xlu1 %v2299_v10, %s2022_s23  ;;  %s286_s23 = scalar_lea.vmem [#allocation10], %s1439_s8  ;;  %s1314_s8 = scalar_lea.sflag [#allocation4], %s2271_s29 }
 0x2d4   : > { %584 = vrot.lane.b32.xlu0 %v2291_v8, %s2023_s27 }
 0x34a   : > { %v475_v24 = vpop.xlane.xlu1 %474 }
 0x34b   : > { %v477_v25 = vsub.f32 %v466_v19, %v475_v24  ;;  %v472_v26 = vpop.xlane.xlu0 %471 }
 0x34c   : > { %v476_v27 = vsub.f32 %v461_v21, %v472_v26 }
 0x34d   : > { %v480_v28 = vmul.f32 1.442695, %v477_v25 }
 0x34e   : > { %v478_v29 = vmul.f32 1.442695, %v476_v27  ;;  %v1759_v30 = vpop.permute.xlu1 %1758 }
 0x34f   : > { %1792 = vpow2.f32 %v480_v28  ;;  %v1761_v31 = vunpack.i.h.bf16 %v1759_v30  ;;  %v1760_v32 = vunpack.i.l.bf16 %v1759_v30  ;;  %v585_v49 = vpop.permute.xlu0 %584  ;;  %v784_v28 = vld [vmem:[#allocation7 + $0x28] sm:$0xff] }
 0x350   : > { %1794 = vpow2.f32 %v478_v29  ;;  %v783_v29 = vld [vmem:[#allocation7 + $0x20] sm:$0xff] }
 0x351   : > { %v1616_v33 = vpack.c.bf16 %v1761_v31, %v1760_v32 }
 0x352   : > { %v1764_v34 = vpop.permute.xlu1 %1763 }
 0x353   : > { %v1766_v35 = vunpack.i.h.bf16 %v1764_v34  ;;  %v1765_v36 = vunpack.i.l.bf16 %v1764_v34  ;;  %1617 = vmatprep.subr.bf16.mxu1 %v1616_v33 }
 0x354   : > { %1619 = vmatpush3.bf16.msra.mxu1 %v1616_v33 }
 0x355   : > { %v1620_v37 = vpack.c.bf16 %v1766_v35, %v1765_v36 }
 0x357   : > { %1622 = vmatprep.subr.msk.bf16.mxu1 %vm2304_vm2, %v1620_v37 }
 0x359   : > { %v1793_v38 = vpop.eup %1792 }
 0x35a   : > { %v485_v39 = vsel %vm469_vm3, %v1793_v38, 0.0  ;;  %v1795_v40 = vpop.eup %1794 }
 0x35b   : > { %486 = vadd.xlane.f32.xlu1 %v485_v39  ;;  %v482_v41 = vsel %vm469_vm3, %v1795_v40, 0.0 }
 0x35f   : > { %483 = vadd.xlane.f32.xlu1 %v482_v41 }
 0x370   : > { %582 = vrot.lane.b32.xlu1 %v2293_v9, %s2023_s27  ;;  %s1327_s27 = sshll.u32 %s286_s23, 4  ;;  %s2395_s27 = int_to_ptr.vmem [resolvable:$true] %s1327_s27 }
 0x3e8   : > { %v487_v42 = vpop.xlane.xlu1 %486 }
 0x3e9   : > { %1796 = vrcp.f32 %v487_v42 }
 0x3ec   : > { %v484_v43 = vpop.xlane.xlu1 %483 }
 0x3ed   : > { %1798 = vrcp.f32 %v484_v43 }
 0x3f0   : > { %v583_v48 = vpop.permute.xlu1 %582 }
 0x3f3   : > { %v1797_v44 = vpop.eup %1796 }
 0x3f4   : > { %v491_v47 = vmul.f32 %v1797_v44, %v1793_v38 }
 0x3f7   : > { %v1799_v45 = vpop.eup %1798 }
 0x3f8   : > { %v490_v46 = vmul.f32 %v1799_v45, %v1795_v40 }
 0x3fa   : > { %1546 = vmatprep.mubr.msk.f32.mxu1 %vm469_vm3, %v490_v46 }
 0x3fb   : > { %1547 = vmatmul.mubr.msk.f32.vlgmr.msra.gmra.mrb[2].mxu1 %vm469_vm3, %v491_v47 }
 0x3fc   : > { %1625 = vmatpush3.bf16.xpose.msk.msra.mxu1 %vm2304_vm2, %v1620_v37  ;;  %1553 = vmatprep.mubr.msk.f32.mxu1 %vm385_vm1, %v583_v48 }
 0x403   : > { %1554 = vmatmul.mubr.msk.f32.vlgmr.msra.gmra.mrb[4].mxu1 %vm385_vm1, %v585_v49 }
 0x4ce   : > { %v2330_v50 = vpop.f32.mrb[2].mxu1 }
 0x4cf   : > { %v2332_v51 = vpop.f32.mrb[3].mxu1 }
 0x4d6   : > { %v1555_v54 = vpop.f32.mrb[4].mxu1 }
 0x4d7   : > { %v670_v55 = vadd.f32 %v1555_v54, %v581_v52  ;;  %v664_v56 = vpop.f32.mrb[5].mxu1 }
 0x4d8   : > { %v665_v57 = vadd.f32 %v664_v56, %v580_v53 }
 0x4d9   : > { %v676_v58 = vsel %vm469_vm3, %v670_v55, -inf }
 0x4da   : > { %677 = vmax.xlane.f32.xlu0 %v676_v58  ;;  %v673_v59 = vsel %vm469_vm3, %v665_v57, -inf }
 0x4db   : > { %674 = vmax.xlane.f32.xlu1 %v673_v59 }
 0x4ec   : > { %1768 = vrot.lane.b32.xlu1 %v2299_v10, %s2024_s13  ;;  %s1479_s13 = sshll.u32 %s2087_s22, 8  ;;  %s1938_s22 = scalar_lea.vmem %s2395_s27, 256 }
 0x4ed   : > { %p1939_p10 = scmp.ne.s32.totalorder %s2395_s27, %s1938_s22 }
 0x4ef   : > { %p1940_p3 = pnand %p1939_p10, %p2220_p5 }
 0x4f0   : > { %1773 = vrot.lane.b32.xlu0 %v2299_v10, %s2025_s16  ;;  %785 = vrot.lane.b32.xlu1 %v2293_v9, %s2026_s28 }
 0x4f1   : > { %p1941_p7 = pneg %p1940_p3 }
 0x567   : > { %v678_v60 = vpop.xlane.xlu0 %677 }
 0x568   : > { %v680_v61 = vsub.f32 %v670_v55, %v678_v60  ;;  %v675_v62 = vpop.xlane.xlu1 %674 }
 0x569   : > { %v679_v63 = vsub.f32 %v665_v57, %v675_v62 }
 0x56a   : > { %v683_v0 = vmul.f32 1.442695, %v680_v61 }
 0x56b   : > { %v681_v1 = vmul.f32 1.442695, %v679_v63  ;;  %v1774_v2 = vpop.permute.xlu0 %1773 }
 0x56c   : > { %1800 = vpow2.f32 %v683_v0  ;;  %v1769_v3 = vpop.permute.xlu1 %1768  ;;  %v1776_v4 = vunpack.i.h.bf16 %v1774_v2  ;;  %v1775_v5 = vunpack.i.l.bf16 %v1774_v2  ;;  %v987_v0 = vld [vmem:[#allocation7 + $0x38] sm:$0xff] }
 0x56d   : > { %v1771_v6 = vunpack.i.h.bf16 %v1769_v3  ;;  %v1770_v7 = vunpack.i.l.bf16 %v1769_v3  ;;  %1802 = vpow2.f32 %v681_v1  ;;  %v986_v1 = vld [vmem:[#allocation7 + $0x30] sm:$0xff] }
 0x56e   : > { %v1630_v12 = vpack.c.bf16 %v1776_v4, %v1775_v5 }
 0x56f   : > { %v1626_v11 = vpack.c.bf16 %v1771_v6, %v1770_v7 }
 0x570   : > { %v786_v18 = vpop.permute.xlu1 %785 }
 0x571   : > { %1627 = vmatprep.subr.bf16.mxu0 %v1626_v11 }
 0x572   : > { %1629 = vmatpush3.bf16.msra.mxu0 %v1626_v11 }
 0x573   : > { %1632 = vmatprep.subr.msk.bf16.mxu0 %vm2304_vm2, %v1630_v12 }
 0x576   : > { %v1801_v13 = vpop.eup %1800 }
 0x577   : > { %v688_v15 = vsel %vm469_vm3, %v1801_v13, 0.0  ;;  %v1803_v16 = vpop.eup %1802 }
 0x578   : > { %689 = vadd.xlane.f32.xlu1 %v688_v15  ;;  %v685_v17 = vsel %vm469_vm3, %v1803_v16, 0.0 }
 0x57c   : > { %686 = vadd.xlane.f32.xlu1 %v685_v17 }
 0x58d   : > { %787 = vrot.lane.b32.xlu1 %v2291_v8, %s2026_s28 }
 0x605   : > { %v690_v19 = vpop.xlane.xlu1 %689 }
 0x606   : > { %1804 = vrcp.f32 %v690_v19 }
 0x609   : > { %v687_v20 = vpop.xlane.xlu1 %686 }
 0x60a   : > { %1806 = vrcp.f32 %v687_v20 }
 0x60d   : > { %v788_v25 = vpop.permute.xlu1 %787 }
 0x610   : > { %v1805_v21 = vpop.eup %1804 }
 0x611   : > { %v694_v24 = vmul.f32 %v1805_v21, %v1801_v13 }
 0x614   : > { %v1807_v22 = vpop.eup %1806 }
 0x615   : > { %v693_v23 = vmul.f32 %v1807_v22, %v1803_v16 }
 0x617   : > { %1560 = vmatprep.mubr.msk.f32.mxu0 %vm469_vm3, %v693_v23 }
 0x618   : > { %1561 = vmatmul.mubr.msk.f32.vlgmr.msra.gmra.mrb[2].mxu0 %vm469_vm3, %v694_v24 }
 0x619   : > { %1635 = vmatpush3.bf16.xpose.msk.msra.mxu0 %vm2304_vm2, %v1630_v12  ;;  %1567 = vmatprep.mubr.msk.f32.mxu0 %vm385_vm1, %v786_v18 }
 0x620   : > { %1568 = vmatmul.mubr.msk.f32.vlgmr.msra.gmra.mrb[4].mxu0 %vm385_vm1, %v788_v25 }
 0x6eb   : > { %v2350_v26 = vpop.f32.mrb[2].mxu0 }
 0x6ec   : > { %v2352_v27 = vpop.f32.mrb[3].mxu0 }
 0x6f3   : > { %v1569_v30 = vpop.f32.mrb[4].mxu0 }
 0x6f4   : > { %v873_v31 = vadd.f32 %v1569_v30, %v784_v28  ;;  %v867_v32 = vpop.f32.mrb[5].mxu0 }
 0x6f5   : > { %v868_v33 = vadd.f32 %v867_v32, %v783_v29  ;;  %v1221_v32 = vld [vmem:[#allocation8 + $0x10] sm:$0xff] }
 0x6f6   : > { %v879_v34 = vsel %vm469_vm3, %v873_v31, -inf }
 0x6f7   : > { %880 = vmax.xlane.f32.xlu0 %v879_v34  ;;  %v876_v35 = vsel %vm469_vm3, %v868_v33, -inf  ;;  %v1222_v34 = vld [vmem:[#allocation8 + $0x18] sm:$0xff] }
 0x6f8   : > { %877 = vmax.xlane.f32.xlu1 %v876_v35  ;;  %v1654_v35 = vpack.c.bf16 %v1222_v34, %v1221_v32 }
 0x784   : > { %v881_v36 = vpop.xlane.xlu0 %880 }
 0x785   : > { %v883_v37 = vsub.f32 %v873_v31, %v881_v36  ;;  %v878_v38 = vpop.xlane.xlu1 %877  ;;  %v1220_v31 = vld [vmem:[#allocation8 + $0x8] sm:$0xff] }
 0x786   : > { %v882_v39 = vsub.f32 %v868_v33, %v878_v38 }
 0x787   : > { %v886_v40 = vmul.f32 1.442695, %v883_v37 }
 0x788   : > { %v884_v41 = vmul.f32 1.442695, %v882_v39 }
 0x789   : > { %1808 = vpow2.f32 %v886_v40 }
 0x78a   : > { %1810 = vpow2.f32 %v884_v41 }
 0x793   : > { %v1809_v42 = vpop.eup %1808 }
 0x794   : > { %v1811_v43 = vpop.eup %1810  ;;  %v891_v44 = vsel %vm469_vm3, %v1809_v42, 0.0 }
 0x795   : > { %892 = vadd.xlane.f32.xlu1 %v891_v44  ;;  %v888_v45 = vsel %vm469_vm3, %v1811_v43, 0.0 }
 0x796   : > { %889 = vadd.xlane.f32.xlu0 %v888_v45 }
 0x7a6   : > { %1783 = vrot.lane.b32.xlu1 %v2299_v10, %s2027_s12  ;;  %s2400_s12 = scalar_lea.hbm %s2452_s5, %s1479_s13 }
 0x7aa   : > { %988 = vrot.lane.b32.xlu1 %v2293_v9, %s2028_s9 }
 0x7ac   : > { %1778 = vrot.lane.b32.xlu0 %v2299_v10, %s2029_s15 }
 0x7b0   : > { %990 = vrot.lane.b32.xlu0 %v2291_v8, %s2028_s9  ;;  %s2034_s9 = smov [#allocation10]  }
 0x7b1   : > { %s1942_s15 = sshll.u32 %s2034_s9, 4  ;;  %s1943_s15 = int_to_ptr.vmem [resolvable:$false] %s1942_s15 }
 0x7b2   : > { %p1945_p12 = scmp.lt.s32.totalorder %s2395_s27, %s1943_s15 }
 0x822   : > { %v893_v46 = vpop.xlane.xlu1 %892 }
 0x823   : > { %1812 = vrcp.f32 %v893_v46  ;;  %v890_v47 = vpop.xlane.xlu0 %889 }
 0x824   : > { %1814 = vrcp.f32 %v890_v47 }
 0x826   : > { %v1784_v48 = vpop.permute.xlu1 %1783 }
 0x827   : > { %v1779_v49 = vpop.permute.xlu0 %1778  ;;  %v1786_v52 = vunpack.i.h.bf16 %v1784_v48  ;;  %v1785_v53 = vunpack.i.l.bf16 %v1784_v48 }
 0x828   : > { %v1781_v54 = vunpack.i.h.bf16 %v1779_v49  ;;  %v1780_v55 = vunpack.i.l.bf16 %v1779_v49 }
 0x829   : > { %v1640_v57 = vpack.c.bf16 %v1786_v52, %v1785_v53 }
 0x82a   : > { %v1636_v56 = vpack.c.bf16 %v1781_v54, %v1780_v55  ;;  %v989_v60 = vpop.permute.xlu1 %988 }
 0x82b   : > { %v991_v61 = vpop.permute.xlu0 %990 }
 0x82c   : > { %1637 = vmatprep.subr.bf16.mxu1 %v1636_v56 }
 0x82d   : > { %v1813_v58 = vpop.eup %1812  ;;  %1639 = vmatpush3.bf16.msra.mxu1 %v1636_v56 }
 0x82e   : > { %v1815_v9 = vpop.eup %1814  ;;  %1642 = vmatprep.subr.msk.bf16.mxu1 %vm2304_vm2, %v1640_v57  ;;  %v897_v59 = vmul.f32 %v1813_v58, %v1809_v42 }
 0x82f   : > { %v896_v8 = vmul.f32 %v1815_v9, %v1811_v43 }
 0x831   : > { %1574 = vmatprep.mubr.msk.f32.mxu1 %vm469_vm3, %v896_v8 }
 0x832   : > { %1575 = vmatmul.mubr.msk.f32.vlgmr.msra.gmra.mrb[6].mxu1 %vm469_vm3, %v897_v59 }
 0x833   : > { %1581 = vmatprep.mubr.msk.f32.mxu1 %vm385_vm1, %v989_v60 }
 0x836   : > { %1645 = vmatpush3.bf16.xpose.msk.msra.mxu1 %vm2304_vm2, %v1640_v57 }
 0x83d   : > { %1582 = vmatmul.mubr.msk.f32.vlgmr.msra.gmra.mrb[8].mxu1 %vm385_vm1, %v991_v61 }
 0x905   : > { %v1576_v62 = vpop.f32.mrb[6].mxu1 }
 0x906   : > { %v976_v63 = vpop.f32.mrb[7].mxu1 }
 0x910   : > { %v1583_v2 = vpop.f32.mrb[8].mxu1 }
 0x911   : > { %v1076_v3 = vadd.f32 %v1583_v2, %v987_v0  ;;  %v1070_v4 = vpop.f32.mrb[9].mxu1 }
 0x912   : > { %v1071_v5 = vadd.f32 %v1070_v4, %v986_v1 }
 0x913   : > { %v1082_v6 = vsel %vm469_vm3, %v1076_v3, -inf }
 0x914   : > { %1083 = vmax.xlane.f32.xlu0 %v1082_v6  ;;  %v1079_v7 = vsel %vm469_vm3, %v1071_v5, -inf }
 0x915   : > { %1080 = vmax.xlane.f32.xlu1 %v1079_v7 }
 0x9a1   : > { %v1084_v11 = vpop.xlane.xlu0 %1083 }
 0x9a2   : > { %v1086_v14 = vsub.f32 %v1076_v3, %v1084_v11  ;;  %v1081_v12 = vpop.xlane.xlu1 %1080 }
 0x9a3   : > { %v1085_v13 = vsub.f32 %v1071_v5, %v1081_v12 }
 0x9a4   : > { %v1089_v15 = vmul.f32 1.442695, %v1086_v14 }
 0x9a5   : > { %v1087_v16 = vmul.f32 1.442695, %v1085_v13 }
 0x9a6   : > { %1816 = vpow2.f32 %v1089_v15 }
 0x9a7   : > { %1818 = vpow2.f32 %v1087_v16 }
 0x9b0   : > { %v1817_v17 = vpop.eup %1816 }
 0x9b1   : > { %v1819_v18 = vpop.eup %1818  ;;  %v1094_v19 = vsel %vm469_vm3, %v1817_v17, 0.0 }
 0x9b2   : > { %1095 = vadd.xlane.f32.xlu1 %v1094_v19  ;;  %v1091_v20 = vsel %vm469_vm3, %v1819_v18, 0.0 }
 0x9b3   : > { %1092 = vadd.xlane.f32.xlu0 %v1091_v20 }
 0x9c3   : > { %1190 = vrot.lane.b32.xlu1 %v2352_v27, %s2030_s17 }
 0x9c7   : > { %1192 = vrot.lane.b32.xlu1 %v2350_v26, %s2030_s17 }
 0x9c9   : > { %1788 = vrot.lane.b32.xlu0 %v2299_v10, %s2031_s10  ;;  %v1219_v10 = vld [vmem:[#allocation8] sm:$0xff]  ;;  %s1944_s10 = scalar_lea.vmem %s1943_s15, 512 }
 0x9ca   : > { %v1650_v33 = vpack.c.bf16 %v1220_v31, %v1219_v10  ;;  %p1946_p1 = scmp.lt.s32.totalorder %s1944_s10, %s1938_s22 }
 0x9cb   : > { %1200 = vrot.lane.b32.xlu1 %v1576_v62, %s2032_s11 }
 0x9cc   : > { %p1947_p2 = por %p1946_p1, %p1945_p12 }
 0x9cd   : > { %1198 = vrot.lane.b32.xlu0 %v976_v63, %s2032_s11 }
 0x9ce   : > { %p1948_p4 = pnand %p1947_p2, %p1941_p7 }
 0xa3f   : > { %v1096_v21 = vpop.xlane.xlu1 %1095 }
 0xa40   : > { %1820 = vrcp.f32 %v1096_v21  ;;  %v1093_v22 = vpop.xlane.xlu0 %1092 }
 0xa41   : > { %1822 = vrcp.f32 %v1093_v22 }
 0xa43   : > { %v1191_v38 = vpop.permute.xlu1 %1190 }
 0xa44   : > { %v1789_v23 = vpop.permute.xlu0 %1788  ;;  %v1212_v42 = vsel %vm385_vm1, %v2332_v51, %v1191_v38  ;;  %v1470_v51 = vld [vmem:[%s2451_s4] ss:$0 sm:$0xff] }
 0xa45   : > { %v1791_v24 = vunpack.i.h.bf16 %v1789_v23  ;;  %v1790_v25 = vunpack.i.l.bf16 %v1789_v23 }
 0xa47   : > { %v1646_v28 = vpack.c.bf16 %v1791_v24, %v1790_v25  ;;  %v1193_v39 = vpop.permute.xlu1 %1192 }
 0xa48   : > { %v1199_v41 = vpop.permute.xlu0 %1198  ;;  %v1213_v44 = vsel %vm385_vm1, %v2330_v50, %v1193_v39 }
 0xa49   : > { %1647 = vmatprep.subr.bf16.mxu0 %v1646_v28  ;;  %v1214_v45 = vsel %vm469_vm3, %v1212_v42, %v1199_v41 }
 0xa4a   : > { %v1821_v29 = vpop.eup %1820  ;;  %1649 = vmatpush3.bf16.msra.mxu0 %v1646_v28 }
 0xa4b   : > { %v1823_v27 = vpop.eup %1822  ;;  %v1100_v26 = vmul.f32 %v1821_v29, %v1817_v17  ;;  %1651 = vmatprep.subr.bf16.mxu0 %v1650_v33  ;;  %v1201_v40 = vpop.permute.xlu1 %1200 }
 0xa4c   : > { %v1099_v30 = vmul.f32 %v1823_v27, %v1819_v18  ;;  %v1215_v47 = vsel %vm469_vm3, %v1213_v44, %v1201_v40 }
 0xa4e   : > { %1588 = vmatprep.mubr.msk.f32.mxu0 %vm469_vm3, %v1099_v30 }
 0xa4f   : > { %1589 = vmatmul.mubr.msk.f32.vlgmr.msra.gmra.mrb[6].mxu0 %vm469_vm3, %v1100_v26 }
 0xa50   : > { %1653 = vmatpush3.bf16.msra.mxu0 %v1650_v33 }
 0xa51   : > { %1655 = vmatprep.subr.bf16.mxu0 %v1654_v35 }
 0xa54   : > { %1657 = vmatpush3.bf16.msra.mxu0 %v1654_v35 }
 0xb22   : > { %v1590_v36 = vpop.f32.mrb[6].mxu0 }
 0xb23   : > { %1208 = vrot.lane.b32.xlu1 %v1590_v36, %s2033_s6  ;;  %v1179_v37 = vpop.f32.mrb[7].mxu0 }
 0xb24   : > { %1206 = vrot.lane.b32.xlu0 %v1179_v37, %s2033_s6 }
 0xb95   : > { %v1209_v43 = vpop.permute.xlu1 %1208 }
 0xb96   : > { %v1207_v46 = vpop.permute.xlu0 %1206  ;;  %v1218_v49 = vsel %vm1216_vm4, %v1215_v47, %v1209_v43 }
 0xb97   : > { %v1217_v48 = vsel %vm1216_vm4, %v1214_v45, %v1207_v46 }
 0xb98   : > { %1599 = vmatprep.mubr.msk.f32.mxu0 %vm295_vm0, %v1217_v48 }
 0xb99   : > { %1600 = vmatmul.mubr.msk.f32.vlgmr.msra.gmra.mrb[8].mxu0 %vm295_vm0, %v1218_v49 }
 0xc6c   : > { %v1601_v50 = vpop.f32.mrb[8].mxu0 }
 0xc6d   : > { %v1308_v52 = vadd.f32 %v1601_v50, %v1470_v51  ;;  %v1302_v53 = vpop.f32.mrb[9].mxu0 }
 0xc6e   : > { %v1303_v54 = vadd.f32 %v1470_v51, %v1302_v53 }
 0xc6f   : > { %1312 = vst.msk [vmem:[%s286_s23 + $0x8] sm:$0xff] %vm295_vm0, %v1308_v52 }
 0xc70   : > { %1311 = vst.msk [vmem:[%s286_s23] sm:$0xff] %vm295_vm0, %v1303_v54 }
 0xc71   : > { %1951 = shalt.err (!%p1948_p4)
}
 0xc72   : > { %s1952_s11 = scalar_lea.hbm %s2400_s12, 256  ;;  %s1956_s26 = scalar_lea.hbm %s2452_s5, 512 }
 0xc73   : > { %p1953_p9 = scmp.ne.s32.totalorder %s2400_s12, %s1952_s11  ;;  %p1957_p8 = scmp.lt.u32.totalorder %s2400_s12, %s2452_s5 }
 0xc74   : > { %p1958_p13 = scmp.lt.u32.totalorder %s1956_s26, %s1952_s11  ;;  %p1960_p10 = scmp.lt.u32.totalorder %s1952_s11, %s2400_s12 }
 0xc75   : > { %p1954_p0 = pnand %p1953_p9, %p2220_p5 }
 0xc76   : > { %p1959_p6 = por %p1958_p13, %p1957_p8 }
 0xc77   : > { %p1955_p11 = pneg %p1954_p0 }
 0xc78   : > { %p1961_p3 = por %p1960_p10, %p1959_p6 }
 0xc7a   : > { %p1962_p7 = pnand %p1961_p3, %p1955_p11 }
 0xc7c   : > { %1965 = shalt.err (!%p1962_p7)
}
 0xc7d   : > { %s2035_s16 = smov 128  }
 0xc7e   : > { %1672 = dma.vmem_to_hbm [thread:$0]  (%p2220_p5), %s2395_s27, 256, %s2400_s12, %s1314_s8, %s2035_s16, %s2035_s16, %s2030_s17  }
 0xc7f PF: > { %s1342_s28 = sand.u32 1, %s2000_s18   ;;  %p2472_p12 = scmp.ne.s32.totalorder %s2457_s25, 0 }
 0xc80   : > { %p2473_p1 = scmp.ge.s32.totalorder %s2012_s21, 2  ;;  %s1343_s22 = scalar_lea.sflag [#allocation4], %s1342_s28 }
 0xc82   : > { %p1689_p2 = pnand %p2473_p1, %p2472_p12 }
 0xc84   : > { %1995 = dma.done.wait (!%p1689_p2), %s1343_s22, 256  }
 0xc85   : > { %1997 = vsyncadd (!%p1689_p2), %s1343_s22, 4294967040  ;;  %p20_p4 = scmp.ge.s32.totalorder %s2206_s14, 4   ;;  %s2474_s18 = smov %s2004_s19 }
 0xc86   : > { %s2475_s19 = smov %s2008_s20  ;;  %s2476_s20 = smov %s2216_s30 }
 0xc87   : > { %s2477_s21 = smov %s2206_s14  ;;  %22 = sbr.rel (!%p20_p4) target bundleno = 7 (0x7), region = 100 }
 0xc8e   :  { %1348 = vsyncpa [#allocation3], 1 }
 0xc8f   :  { %1350 = vsyncpa [#allocation3 + $0x1], 1 }
 0xc90   :  { %1351 = vsyncpa [#allocation6], 1 }
 0xc91   :  { %1352 = vsyncpa [#allocation9], 1 }
 0xc92   :  { %1353 = vsyncpa [#allocation4], 1 }
 0xc93   :  { %1355 = vsyncpa [#allocation4 + $0x1], 1 }

// kernel: tpu_custom_call.1
= control target key start
LH: loop header
LB: loop body
LE: loop exit
PB: predicated region body
PF: predicated region fallthrough
CT: control target
= control target key end

     0   :  { %10 = vsyncpa [#allocation3], 0  ;;  %s2447_s0 = inlined_call_operand.hbm [shape: f32[32,32], index: 0, kind: input, shape index: {}]   ;;  %s2448_s1 = inlined_call_operand.hbm [shape: f32[32,96], index: 1, kind: input, shape index: {}]   ;;  %s2449_s2 = inlined_call_operand.hbm [shape: f32[4,16,16], index: 2, kind: input, shape index: {}]   ;;  %s2450_s3 = inlined_call_operand.hbm [shape: f32[32,32], index: 3, kind: input, shape index: {}]   ;;  %s2451_s4 = inlined_call_operand.vmem [shape: f32[1,32], index: 4, kind: input, shape index: {}]   ;;  %s2452_s5 = inlined_call_operand.hbm [shape: f32[32,32], index: 5, kind: output, shape index: {}]  }
   0x1   :  { %12 = vsyncpa [#allocation3 + $0x1], 0 }
   0x2   :  { %13 = vsyncpa [#allocation6], 0 }
   0x3   :  { %14 = vsyncpa [#allocation9], 0 }
   0x4   :  { %15 = vsyncpa [#allocation4], 0 }
   0x5   :  { %17 = vsyncpa [#allocation4 + $0x1], 0  ;;  %s2066_s18 = smov 0   ;;  %s2068_s19 = smov 0  }
   0x6   :  { %s2070_s20 = smov 0   ;;  %s2072_s21 = smov 0  }
   0x7 LB: > { %s2087_s22 = sadd.s32 4294967295, %s2012_s21   ;;  %s1429_s23 = sadd.s32 4294967294, %s2012_s21   ;;  %s2012_s21 = sphi %s2072_s21, %s2477_s21   ;;  %s2008_s20 = sphi %s2070_s20, %s2476_s20   ;;  %s2004_s19 = sphi %s2068_s19, %s2475_s19   ;;  %s2000_s18 = sphi %s2066_s18, %s2474_s18  }
   0x8   : > { %p43_p0 = scmp.ne.s32.totalorder %s2004_s19, %s2000_s18  ;;  %p2453_p1 = scmp.eq.s32.totalorder %s2087_s22, 0 }
   0x9   : > { %p157_p3 = scmp.eq.s32.totalorder %s1429_s23, 1  ;;  %p1430_p5 = scmp.ge.s32.totalorder %s2012_s21, 1 }
   0xa   : > { %p2096_p4 = por %p2453_p1, %p43_p0  ;;  %p164_p7 = scmp.lt.s32.totalorder %s2012_s21, 3 }
   0xb   : > { %p2101_p6 = por %p157_p3, %p43_p0  ;;  %s2014_s27 = smov [#allocation5]  }
   0xc   : > { %s2456_s24 = scalar_select %p2096_p4, 1, 0 }
   0xd   : > { %s2457_s25 = scalar_select %p2101_p6, 1, 0 }
   0xe   : > { %p2106_p8 = pnand %p1430_p5, %p164_p7  ;;  %s176_s28 = sshll.u32 %s2014_s27, 4  ;;  %s2110_s28 = int_to_ptr.vmem [resolvable:$true] %s176_s28 }
   0xf   : > { %s2015_s30 = smov [#allocation7]   ;;  %s2016_s7 = smov [#allocation8]  }
  0x10   : > { %s2458_s26 = scalar_select %p2106_p8, 1, 0 }
  0x11   : > { %p1674_p9 = pneg %p2106_p8  ;;  %s189_s6 = sshll.u32 %s2015_s30, 4  ;;  %s2121_s6 = int_to_ptr.vmem [resolvable:$true] %s189_s6 }
  0x12   : > { %s2123_s8 = sshll.u32 %s2016_s7, 4  ;;  %s1824_s11 = scalar_lea.hbm %s2448_s1, 512  ;;  %s203_s8 = int_to_ptr.vmem [resolvable:$true] %s2123_s8 }
  0x13   : > { %p2117_p11 = pnand %p1674_p9, %p2453_p1  ;;  %p1825_p12 = scmp.ne.s32.totalorder %s2448_s1, %s1824_s11 }
  0x14   : > { %p1831_p5 = scmp.lt.u32.totalorder %s1824_s11, %s2448_s1 }
  0x15   : > { %p2133_p13 = pneg %p2117_p11 }
  0x17   : > { %p1827_p0 = pnand %p2133_p13, %p1825_p12 }
  0x19   : > { %p1828_p3 = pneg %p1827_p0 }
  0x1b   : > { %p1833_p7 = pnand %p1831_p5, %p1828_p3 }
  0x1d   : > { %1836 = shalt.err (!%p1833_p7)
}
  0x1e   : > { %s1837_s17 = scalar_lea.vmem %s2110_s28, 512  ;;  %p1845_p2 = scmp.lt.s32.totalorder %s2110_s28, %s2110_s28 }
  0x1f   : > { %p1838_p9 = scmp.ne.s32.totalorder %s2110_s28, %s1837_s17  ;;  %p1846_p6 = scmp.lt.s32.totalorder %s1837_s17, %s1837_s17 }
  0x21   : > { %p1840_p10 = pnand %p1838_p9, %p2133_p13  ;;  %p1847_p12 = por %p1846_p6, %p1845_p2 }
  0x23   : > { %p1841_p1 = pneg %p1840_p10 }
  0x25   : > { %p1848_p0 = pnand %p1847_p12, %p1841_p1 }
  0x27   : > { %1851 = shalt.err (!%p1848_p0)
}
  0x28   : > { %s2017_s23 = smov 128   ;;  %s2018_s27 = smov 8  }
  0x29   : > { %1677 = dma.hbm_to_vmem [thread:$0]  (!%p2117_p11), %s2448_s1, 512, %s2110_s28, [#allocation6], %s2017_s23, %s2017_s23, %s2018_s27  }
  0x2a   : > { %s1852_s11 = scalar_lea.hbm %s2449_s2, 1024 }
  0x2b   : > { %p1853_p1 = scmp.ne.s32.totalorder %s2449_s2, %s1852_s11  ;;  %p1859_p10 = scmp.lt.u32.totalorder %s1852_s11, %s2449_s2 }
  0x2d   : > { %p1855_p2 = pnand %p1853_p1, %p2133_p13 }
  0x2f   : > { %p1856_p6 = pneg %p1855_p2 }
  0x31   : > { %p1861_p3 = pnand %p1859_p10, %p1856_p6 }
  0x33   : > { %1864 = shalt.err (!%p1861_p3)
}
  0x34   : > { %s1865_s28 = scalar_lea.vmem %s2121_s6, 1024  ;;  %p1873_p12 = scmp.lt.s32.totalorder %s2121_s6, %s2121_s6 }
  0x35   : > { %p1866_p5 = scmp.ne.s32.totalorder %s2121_s6, %s1865_s28  ;;  %p1874_p0 = scmp.lt.s32.totalorder %s1865_s28, %s1865_s28 }
  0x37   : > { %p1868_p7 = pnand %p1866_p5, %p2133_p13  ;;  %p1875_p1 = por %p1874_p0, %p1873_p12 }
  0x39   : > { %p1869_p9 = pneg %p1868_p7 }
  0x3b   : > { %p1876_p2 = pnand %p1875_p1, %p1869_p9 }
  0x3d   : > { %1879 = shalt.err (!%p1876_p2)
}
  0x3e   : > { %1680 = dma.hbm_to_vmem [thread:$0]  (!%p2117_p11), %s2449_s2, 1024, %s2121_s6, [#allocation6], %s2017_s23, %s2017_s23, %s2018_s27  }
  0x3f   : > { %s1880_s10 = scalar_lea.hbm %s2450_s3, 512 }
  0x40   : > { %p1881_p6 = scmp.ne.s32.totalorder %s2450_s3, %s1880_s10  ;;  %p1887_p5 = scmp.lt.u32.totalorder %s1880_s10, %s2450_s3 }
  0x42   : > { %p1883_p10 = pnand %p1881_p6, %p2133_p13 }
  0x44   : > { %p1884_p3 = pneg %p1883_p10 }
  0x46   : > { %p1889_p7 = pnand %p1887_p5, %p1884_p3 }
  0x48   : > { %1892 = shalt.err (!%p1889_p7)
}
  0x49   : > { %s1893_s16 = scalar_lea.vmem %s203_s8, 512  ;;  %p1901_p1 = scmp.lt.s32.totalorder %s203_s8, %s203_s8 }
  0x4a   : > { %p1894_p9 = scmp.ne.s32.totalorder %s203_s8, %s1893_s16  ;;  %p1902_p2 = scmp.lt.s32.totalorder %s1893_s16, %s1893_s16 }
  0x4c   : > { %p1896_p12 = pnand %p1894_p9, %p2133_p13  ;;  %p1903_p4 = por %p1902_p2, %p1901_p1 }
  0x4e   : > { %p1897_p0 = pneg %p1896_p12 }
  0x50   : > { %p1904_p8 = pnand %p1903_p4, %p1897_p0 }
  0x52   : > { %1907 = shalt.err (!%p1904_p8)
}
  0x53   : > { %1683 = dma.hbm_to_vmem [thread:$0]  (!%p2117_p11), %s2450_s3, 512, %s203_s8, [#allocation9], %s2017_s23, %s2017_s23, %s2018_s27  }
  0x54   : > { %s2206_s14 = sadd.s32 1, %s2012_s21   ;;  %s30_s17 = sadd.s32 1, %s2008_s20 }
  0x55   : > { %s27_s29 = ssub.s32 %s2012_s21, %s2206_s14  ;;  %p37_p8 = scmp.ne.s32.totalorder %s2008_s20, %s2004_s19 }
  0x56   : > { %p28_p4 = scmp.eq.s32.totalorder %s27_s29, 0  ;;  %p38_p13 = scmp.eq.s32.totalorder %s2012_s21, 0 }
  0x57   : > { %p1695_p6 = scmp.lt.s32.totalorder %s2012_s21, 2  ;;  %p2461_p3 = scmp.eq.s32.totalorder %s2087_s22, 1 }
  0x58   : > { %s2216_s30 = scalar_select %p28_p4, %s2008_s20, %s30_s17  }
  0x59   : > { %p39_p10 = por %p38_p13, %p37_p8  ;;  %p2220_p5 = por %p2461_p3, %p37_p8 }
  0x5a   : > { %s219_s9 = sand.u32 1, %s2008_s20   ;;  %s1478_s10 = sshll.u32 %s2012_s21, 8 }
  0x5b   : > { %s1435_s8 = sshll.u32 %s219_s9, 4  ;;  %s2229_s13 = scalar_lea.hbm %s2447_s0, %s1478_s10 }
  0x5c   : > { %s223_s15 = scalar_lea.vmem [#allocation2], %s1435_s8  ;;  %p2231_p11 = pnand %p1695_p6, %p39_p10 }
  0x5d   : > { %s230_s16 = sshll.u32 %s223_s15, 4  ;;  %s2237_s28 = scalar_lea.sflag [#allocation3], %s219_s9  ;;  %s2235_s16 = int_to_ptr.vmem [resolvable:$true] %s230_s16 }
  0x5e   : > { %s1908_s29 = scalar_lea.hbm %s2229_s13, 256  ;;  %p1910_p9 = pneg %p2231_p11 }
  0x5f   : > { %p1909_p7 = scmp.ne.s32.totalorder %s2229_s13, %s1908_s29  ;;  %s1913_s8 = scalar_lea.hbm %s2447_s0, 512 }
  0x60   : > { %p1914_p1 = scmp.lt.u32.totalorder %s2229_s13, %s2447_s0  ;;  %p1915_p2 = scmp.lt.u32.totalorder %s1913_s8, %s1908_s29 }
  0x61   : > { %p1911_p12 = pnand %p1910_p9, %p1909_p7  ;;  %p1917_p8 = scmp.lt.u32.totalorder %s1908_s29, %s2229_s13 }
  0x62   : > { %p1916_p4 = por %p1915_p2, %p1914_p1 }
  0x63   : > { %p1912_p0 = pneg %p1911_p12 }
  0x64   : > { %p1918_p13 = por %p1917_p8, %p1916_p4 }
  0x66   : > { %p1919_p6 = pnand %p1918_p13, %p1912_p0 }
  0x68   : > { %1922 = shalt.err (!%p1919_p6)
}
  0x69   : > { %s1923_s9 = scalar_lea.vmem %s2235_s16, 256  ;;  %s2019_s15 = smov [#allocation2]  }
  0x6a   : > { %p1924_p10 = scmp.ne.s32.totalorder %s2235_s16, %s1923_s9  ;;  %s1928_s17 = sshll.u32 %s2019_s15, 4  ;;  %s1929_s17 = int_to_ptr.vmem [resolvable:$false] %s1928_s17 }
  0x6b   : > { %s1930_s10 = scalar_lea.vmem %s1929_s17, 512  ;;  %p1931_p12 = scmp.lt.s32.totalorder %s2235_s16, %s1929_s17 }
  0x6c   : > { %p1926_p3 = pnand %p1924_p10, %p1910_p9  ;;  %p1932_p1 = scmp.lt.s32.totalorder %s1930_s10, %s1923_s9 }
  0x6e   : > { %p1927_p7 = pneg %p1926_p3  ;;  %p1933_p2 = por %p1932_p1, %p1931_p12 }
  0x70   : > { %p1934_p4 = pnand %p1933_p2, %p1927_p7 }
  0x72   : > { %1937 = shalt.err (!%p1934_p4)
}
  0x73   : > { %1687 = dma.hbm_to_vmem [thread:$0]  (!%p2231_p11), %s2229_s13, 256, %s2235_s16, %s2237_s28, %s2017_s23, %s2017_s23, %s2018_s27  }
  0x74   : > { %p2464_p9 = scmp.ne.s32.totalorder %s2458_s26, 0 }
  0x75   : > { %s2271_s29 = sand.u32 (!%p2464_p9), 1, %s2004_s19   ;;  %p2465_p0 = scmp.ne.s32.totalorder (!%p2464_p9), %s2456_s24, 0 }
  0x76   : > { %242 = sbr.rel (%p2464_p9) target bundleno = 3199 (0xc7f), region = 40  ;;  %s1439_s8 = sshll.u32 (!%p2464_p9), %s2271_s29, 4 }
  0x77   : > { %s245_s11 = scalar_lea.sflag (!%p2464_p9), [#allocation3], %s2271_s29  ;;  %s248_s6 = scalar_lea.vmem (!%p2464_p9), [#allocation2], %s1439_s8 }
  0x7d   : > { %1983 = dma.done.wait (%p2465_p0), %s245_s11, 256  }
  0x7e   : > { %1985 = vsyncadd (%p2465_p0), %s245_s11, 4294967040  ;;  %p2466_p11 = scmp.eq.s32.totalorder %s2087_s22, 0 }
  0x80   : > { %1987 = dma.done.wait (%p2466_p11), [#allocation6], 1536   ;;  %p2467_p8 = pmov %p2466_p11 }
  0x82   : > { %1989 = vsyncadd (%p2467_p8), [#allocation6], 4294965760  ;;  %p2468_p13 = pmov %p2467_p8 }
  0x83   : > { %p2469_p6 = pmov %p2467_p8 }
  0x84   : > { %1991 = dma.done.wait (%p2468_p13), [#allocation9], 512  }
  0x85   : > { %1993 = vsyncadd (%p2469_p6), [#allocation9], 4294966784  ;;  %vm295_vm0 = vcmask 261120   ;;  %v291_v0 = vld [vmem:[#allocation5] sm:$0xff]  ;;  %v292_v1 = vld [vmem:[#allocation5 + $0x8] sm:$0xff]  ;;  %vm385_vm1 = vcmask 64512  }
  0x86   : > { %v293_v2 = vld [vmem:[#allocation5 + $0x10] sm:$0xff]  ;;  %v1602_v3 = vpack.c.bf16 %v292_v1, %v291_v0  ;;  %v294_v4 = vld [vmem:[#allocation5 + $0x18] sm:$0xff]  ;;  %s2020_s24 = smov 96   ;;  %vm2304_vm2 = vmpackc.low %vm385_vm1, %vm385_vm1  ;;  %vm469_vm3 = vcmask 130048   ;;  %s2021_s26 = smov 64   ;;  %vm1216_vm4 = vcmask 195584  }
  0x87   : > { %v289_v5 = vld [vmem:[%s248_s6] sm:$0xff]  ;;  %v1606_v6 = vpack.c.bf16 %v294_v4, %v293_v2  ;;  %v290_v7 = vld [vmem:[%s248_s6 + $0x8] sm:$0xff]  ;;  %s2022_s23 = smov 88   ;;  %s2023_s27 = smov 120  }
  0x88   : > { %1532 = vmatprep.mubr.msk.f32.mxu0 %vm295_vm0, %v289_v5  ;;  %1603 = vmatprep.subr.bf16.mxu0 %v1602_v3  ;;  %v378_v16 = vld [vmem:[#allocation7 + $0x8] sm:$0xff]  ;;  %v377_v17 = vld [vmem:[#allocation7] sm:$0xff]  ;;  %v581_v52 = vld [vmem:[#allocation7 + $0x18] sm:$0xff]  ;;  %s2024_s13 = smov 56   ;;  %s2025_s16 = smov 80  }
  0x89   : > { %1605 = vmatpush3.bf16.msra.mxu0 %v1602_v3  ;;  %v580_v53 = vld [vmem:[#allocation7 + $0x10] sm:$0xff]  ;;  %s2026_s28 = smov 112   ;;  %s2027_s12 = smov 72  }
  0x8a   : > { %1607 = vmatprep.subr.bf16.mxu0 %v1606_v6  ;;  %s2028_s9 = smov 104   ;;  %s2029_s15 = smov 48  }
  0x8b   : > { %s2030_s17 = smov 8   ;;  %s2031_s10 = smov 40  }
  0x8c   : > { %s2032_s11 = smov 16   ;;  %s2033_s6 = smov 24  }
  0x8d   : > { %1609 = vmatpush3.bf16.msra.mxu0 %v1606_v6 }
  0x90   : > { %1533 = vmatmul.mubr.msk.f32.vlgmr.msra.gmra.mrb[0].mxu0 %vm295_vm0, %v290_v7 }
 0x163   : > { %v2291_v8 = vpop.f32.mrb[0].mxu0 }
 0x164   : > { %v2293_v9 = vpop.f32.mrb[1].mxu0 }
 0x165   : > { %1539 = vmatprep.mubr.msk.f32.mxu1 %vm385_vm1, %v2293_v9  ;;  %v2299_v10 = vpack.i.bf16 %v2291_v8, %v2293_v9 }
 0x167   : > { %1753 = vrot.lane.b32.xlu0 %v2299_v10, %s2020_s24 }
 0x1d9   : > { %v1754_v11 = vpop.permute.xlu0 %1753 }
 0x1da   : > { %v1756_v12 = vunpack.i.h.bf16 %v1754_v11  ;;  %v1755_v13 = vunpack.i.l.bf16 %v1754_v11 }
 0x1dc   : > { %v1610_v15 = vpack.c.bf16 %v1756_v12, %v1755_v13 }
 0x1de   : > { %1612 = vmatprep.subr.msk.bf16.mxu1 %vm2304_vm2, %v1610_v15 }
 0x1df   : > { %1615 = vmatpush3.bf16.xpose.msk.msra.mxu1 %vm2304_vm2, %v1610_v15 }
 0x1e6   : > { %1540 = vmatmul.mubr.msk.f32.vlgmr.msra.gmra.mrb[0].mxu1 %vm385_vm1, %v2291_v8 }
 0x2b9   : > { %v1541_v18 = vpop.f32.mrb[0].mxu1 }
 0x2ba   : > { %v466_v19 = vadd.f32 %v1541_v18, %v378_v16  ;;  %v460_v20 = vpop.f32.mrb[1].mxu1 }
 0x2bb   : > { %v461_v21 = vadd.f32 %v460_v20, %v377_v17 }
 0x2bc   : > { %v473_v22 = vsel %vm469_vm3, %v466_v19, -inf }
 0x2bd   : > { %474 = vmax.xlane.f32.xlu1 %v473_v22  ;;  %v470_v23 = vsel %vm469_vm3, %v461_v21, -inf }
 0x2be   : > { %471 = vmax.xlane.f32.xlu0 %v470_v23 }
 0x2ce   : > { %1758 = vrot.lane.b32.xlu1 %v2299_v10, %s2021_s26 }
 0x2d2   : > { %1763 = vrot.lane.b32.xlu1 %v2299_v10, %s2022_s23  ;;  %s286_s23 = scalar_lea.vmem [#allocation10], %s1439_s8  ;;  %s1314_s8 = scalar_lea.sflag [#allocation4], %s2271_s29 }
 0x2d4   : > { %584 = vrot.lane.b32.xlu0 %v2291_v8, %s2023_s27 }
 0x34a   : > { %v475_v24 = vpop.xlane.xlu1 %474 }
 0x34b   : > { %v477_v25 = vsub.f32 %v466_v19, %v475_v24  ;;  %v472_v26 = vpop.xlane.xlu0 %471 }
 0x34c   : > { %v476_v27 = vsub.f32 %v461_v21, %v472_v26 }
 0x34d   : > { %v480_v28 = vmul.f32 1.442695, %v477_v25 }
 0x34e   : > { %v478_v29 = vmul.f32 1.442695, %v476_v27  ;;  %v1759_v30 = vpop.permute.xlu1 %1758 }
 0x34f   : > { %1792 = vpow2.f32 %v480_v28  ;;  %v1761_v31 = vunpack.i.h.bf16 %v1759_v30  ;;  %v1760_v32 = vunpack.i.l.bf16 %v1759_v30  ;;  %v585_v49 = vpop.permute.xlu0 %584  ;;  %v784_v28 = vld [vmem:[#allocation7 + $0x28] sm:$0xff] }
 0x350   : > { %1794 = vpow2.f32 %v478_v29  ;;  %v783_v29 = vld [vmem:[#allocation7 + $0x20] sm:$0xff] }
 0x351   : > { %v1616_v33 = vpack.c.bf16 %v1761_v31, %v1760_v32 }
 0x352   : > { %v1764_v34 = vpop.permute.xlu1 %1763 }
 0x353   : > { %v1766_v35 = vunpack.i.h.bf16 %v1764_v34  ;;  %v1765_v36 = vunpack.i.l.bf16 %v1764_v34  ;;  %1617 = vmatprep.subr.bf16.mxu1 %v1616_v33 }
 0x354   : > { %1619 = vmatpush3.bf16.msra.mxu1 %v1616_v33 }
 0x355   : > { %v1620_v37 = vpack.c.bf16 %v1766_v35, %v1765_v36 }
 0x357   : > { %1622 = vmatprep.subr.msk.bf16.mxu1 %vm2304_vm2, %v1620_v37 }
 0x359   : > { %v1793_v38 = vpop.eup %1792 }
 0x35a   : > { %v485_v39 = vsel %vm469_vm3, %v1793_v38, 0.0  ;;  %v1795_v40 = vpop.eup %1794 }
 0x35b   : > { %486 = vadd.xlane.f32.xlu1 %v485_v39  ;;  %v482_v41 = vsel %vm469_vm3, %v1795_v40, 0.0 }
 0x35f   : > { %483 = vadd.xlane.f32.xlu1 %v482_v41 }
 0x370   : > { %582 = vrot.lane.b32.xlu1 %v2293_v9, %s2023_s27  ;;  %s1327_s27 = sshll.u32 %s286_s23, 4  ;;  %s2395_s27 = int_to_ptr.vmem [resolvable:$true] %s1327_s27 }
 0x3e8   : > { %v487_v42 = vpop.xlane.xlu1 %486 }
 0x3e9   : > { %1796 = vrcp.f32 %v487_v42 }
 0x3ec   : > { %v484_v43 = vpop.xlane.xlu1 %483 }
 0x3ed   : > { %1798 = vrcp.f32 %v484_v43 }
 0x3f0   : > { %v583_v48 = vpop.permute.xlu1 %582 }
 0x3f3   : > { %v1797_v44 = vpop.eup %1796 }
 0x3f4   : > { %v491_v47 = vmul.f32 %v1797_v44, %v1793_v38 }
 0x3f7   : > { %v1799_v45 = vpop.eup %1798 }
 0x3f8   : > { %v490_v46 = vmul.f32 %v1799_v45, %v1795_v40 }
 0x3fa   : > { %1546 = vmatprep.mubr.msk.f32.mxu1 %vm469_vm3, %v490_v46 }
 0x3fb   : > { %1547 = vmatmul.mubr.msk.f32.vlgmr.msra.gmra.mrb[2].mxu1 %vm469_vm3, %v491_v47 }
 0x3fc   : > { %1625 = vmatpush3.bf16.xpose.msk.msra.mxu1 %vm2304_vm2, %v1620_v37  ;;  %1553 = vmatprep.mubr.msk.f32.mxu1 %vm385_vm1, %v583_v48 }
 0x403   : > { %1554 = vmatmul.mubr.msk.f32.vlgmr.msra.gmra.mrb[4].mxu1 %vm385_vm1, %v585_v49 }
 0x4ce   : > { %v2330_v50 = vpop.f32.mrb[2].mxu1 }
 0x4cf   : > { %v2332_v51 = vpop.f32.mrb[3].mxu1 }
 0x4d6   : > { %v1555_v54 = vpop.f32.mrb[4].mxu1 }
 0x4d7   : > { %v670_v55 = vadd.f32 %v1555_v54, %v581_v52  ;;  %v664_v56 = vpop.f32.mrb[5].mxu1 }
 0x4d8   : > { %v665_v57 = vadd.f32 %v664_v56, %v580_v53 }
 0x4d9   : > { %v676_v58 = vsel %vm469_vm3, %v670_v55, -inf }
 0x4da   : > { %677 = vmax.xlane.f32.xlu0 %v676_v58  ;;  %v673_v59 = vsel %vm469_vm3, %v665_v57, -inf }
 0x4db   : > { %674 = vmax.xlane.f32.xlu1 %v673_v59 }
 0x4ec   : > { %1768 = vrot.lane.b32.xlu1 %v2299_v10, %s2024_s13  ;;  %s1479_s13 = sshll.u32 %s2087_s22, 8  ;;  %s1938_s22 = scalar_lea.vmem %s2395_s27, 256 }
 0x4ed   : > { %p1939_p10 = scmp.ne.s32.totalorder %s2395_s27, %s1938_s22 }
 0x4ef   : > { %p1940_p3 = pnand %p1939_p10, %p2220_p5 }
 0x4f0   : > { %1773 = vrot.lane.b32.xlu0 %v2299_v10, %s2025_s16  ;;  %785 = vrot.lane.b32.xlu1 %v2293_v9, %s2026_s28 }
 0x4f1   : > { %p1941_p7 = pneg %p1940_p3 }
 0x567   : > { %v678_v60 = vpop.xlane.xlu0 %677 }
 0x568   : > { %v680_v61 = vsub.f32 %v670_v55, %v678_v60  ;;  %v675_v62 = vpop.xlane.xlu1 %674 }
 0x569   : > { %v679_v63 = vsub.f32 %v665_v57, %v675_v62 }
 0x56a   : > { %v683_v0 = vmul.f32 1.442695, %v680_v61 }
 0x56b   : > { %v681_v1 = vmul.f32 1.442695, %v679_v63  ;;  %v1774_v2 = vpop.permute.xlu0 %1773 }
 0x56c   : > { %1800 = vpow2.f32 %v683_v0  ;;  %v1769_v3 = vpop.permute.xlu1 %1768  ;;  %v1776_v4 = vunpack.i.h.bf16 %v1774_v2  ;;  %v1775_v5 = vunpack.i.l.bf16 %v1774_v2  ;;  %v987_v0 = vld [vmem:[#allocation7 + $0x38] sm:$0xff] }
 0x56d   : > { %v1771_v6 = vunpack.i.h.bf16 %v1769_v3  ;;  %v1770_v7 = vunpack.i.l.bf16 %v1769_v3  ;;  %1802 = vpow2.f32 %v681_v1  ;;  %v986_v1 = vld [vmem:[#allocation7 + $0x30] sm:$0xff] }
 0x56e   : > { %v1630_v12 = vpack.c.bf16 %v1776_v4, %v1775_v5 }
 0x56f   : > { %v1626_v11 = vpack.c.bf16 %v1771_v6, %v1770_v7 }
 0x570   : > { %v786_v18 = vpop.permute.xlu1 %785 }
 0x571   : > { %1627 = vmatprep.subr.bf16.mxu0 %v1626_v11 }
 0x572   : > { %1629 = vmatpush3.bf16.msra.mxu0 %v1626_v11 }
 0x573   : > { %1632 = vmatprep.subr.msk.bf16.mxu0 %vm2304_vm2, %v1630_v12 }
 0x576   : > { %v1801_v13 = vpop.eup %1800 }
 0x577   : > { %v688_v15 = vsel %vm469_vm3, %v1801_v13, 0.0  ;;  %v1803_v16 = vpop.eup %1802 }
 0x578   : > { %689 = vadd.xlane.f32.xlu1 %v688_v15  ;;  %v685_v17 = vsel %vm469_vm3, %v1803_v16, 0.0 }
 0x57c   : > { %686 = vadd.xlane.f32.xlu1 %v685_v17 }
 0x58d   : > { %787 = vrot.lane.b32.xlu1 %v2291_v8, %s2026_s28 }
 0x605   : > { %v690_v19 = vpop.xlane.xlu1 %689 }
 0x606   : > { %1804 = vrcp.f32 %v690_v19 }
 0x609   : > { %v687_v20 = vpop.xlane.xlu1 %686 }
 0x60a   : > { %1806 = vrcp.f32 %v687_v20 }
 0x60d   : > { %v788_v25 = vpop.permute.xlu1 %787 }
 0x610   : > { %v1805_v21 = vpop.eup %1804 }
 0x611   : > { %v694_v24 = vmul.f32 %v1805_v21, %v1801_v13 }
 0x614   : > { %v1807_v22 = vpop.eup %1806 }
 0x615   : > { %v693_v23 = vmul.f32 %v1807_v22, %v1803_v16 }
 0x617   : > { %1560 = vmatprep.mubr.msk.f32.mxu0 %vm469_vm3, %v693_v23 }
 0x618   : > { %1561 = vmatmul.mubr.msk.f32.vlgmr.msra.gmra.mrb[2].mxu0 %vm469_vm3, %v694_v24 }
 0x619   : > { %1635 = vmatpush3.bf16.xpose.msk.msra.mxu0 %vm2304_vm2, %v1630_v12  ;;  %1567 = vmatprep.mubr.msk.f32.mxu0 %vm385_vm1, %v786_v18 }
 0x620   : > { %1568 = vmatmul.mubr.msk.f32.vlgmr.msra.gmra.mrb[4].mxu0 %vm385_vm1, %v788_v25 }
 0x6eb   : > { %v2350_v26 = vpop.f32.mrb[2].mxu0 }
 0x6ec   : > { %v2352_v27 = vpop.f32.mrb[3].mxu0 }
 0x6f3   : > { %v1569_v30 = vpop.f32.mrb[4].mxu0 }
 0x6f4   : > { %v873_v31 = vadd.f32 %v1569_v30, %v784_v28  ;;  %v867_v32 = vpop.f32.mrb[5].mxu0 }
 0x6f5   : > { %v868_v33 = vadd.f32 %v867_v32, %v783_v29  ;;  %v1221_v32 = vld [vmem:[#allocation8 + $0x10] sm:$0xff] }
 0x6f6   : > { %v879_v34 = vsel %vm469_vm3, %v873_v31, -inf }
 0x6f7   : > { %880 = vmax.xlane.f32.xlu0 %v879_v34  ;;  %v876_v35 = vsel %vm469_vm3, %v868_v33, -inf  ;;  %v1222_v34 = vld [vmem:[#allocation8 + $0x18] sm:$0xff] }
 0x6f8   : > { %877 = vmax.xlane.f32.xlu1 %v876_v35  ;;  %v1654_v35 = vpack.c.bf16 %v1222_v34, %v1221_v32 }
 0x784   : > { %v881_v36 = vpop.xlane.xlu0 %880 }
 0x785   : > { %v883_v37 = vsub.f32 %v873_v31, %v881_v36  ;;  %v878_v38 = vpop.xlane.xlu1 %877  ;;  %v1220_v31 = vld [vmem:[#allocation8 + $0x8] sm:$0xff] }
 0x786   : > { %v882_v39 = vsub.f32 %v868_v33, %v878_v38 }
 0x787   : > { %v886_v40 = vmul.f32 1.442695, %v883_v37 }
 0x788   : > { %v884_v41 = vmul.f32 1.442695, %v882_v39 }
 0x789   : > { %1808 = vpow2.f32 %v886_v40 }
 0x78a   : > { %1810 = vpow2.f32 %v884_v41 }
 0x793   : > { %v1809_v42 = vpop.eup %1808 }
 0x794   : > { %v1811_v43 = vpop.eup %1810  ;;  %v891_v44 = vsel %vm469_vm3, %v1809_v42, 0.0 }
 0x795   : > { %892 = vadd.xlane.f32.xlu1 %v891_v44  ;;  %v888_v45 = vsel %vm469_vm3, %v1811_v43, 0.0 }
 0x796   : > { %889 = vadd.xlane.f32.xlu0 %v888_v45 }
 0x7a6   : > { %1783 = vrot.lane.b32.xlu1 %v2299_v10, %s2027_s12  ;;  %s2400_s12 = scalar_lea.hbm %s2452_s5, %s1479_s13 }
 0x7aa   : > { %988 = vrot.lane.b32.xlu1 %v2293_v9, %s2028_s9 }
 0x7ac   : > { %1778 = vrot.lane.b32.xlu0 %v2299_v10, %s2029_s15 }
 0x7b0   : > { %990 = vrot.lane.b32.xlu0 %v2291_v8, %s2028_s9  ;;  %s2034_s9 = smov [#allocation10]  }
 0x7b1   : > { %s1942_s15 = sshll.u32 %s2034_s9, 4  ;;  %s1943_s15 = int_to_ptr.vmem [resolvable:$false] %s1942_s15 }
 0x7b2   : > { %p1945_p12 = scmp.lt.s32.totalorder %s2395_s27, %s1943_s15 }
 0x822   : > { %v893_v46 = vpop.xlane.xlu1 %892 }
 0x823   : > { %1812 = vrcp.f32 %v893_v46  ;;  %v890_v47 = vpop.xlane.xlu0 %889 }
 0x824   : > { %1814 = vrcp.f32 %v890_v47 }
 0x826   : > { %v1784_v48 = vpop.permute.xlu1 %1783 }
 0x827   : > { %v1779_v49 = vpop.permute.xlu0 %1778  ;;  %v1786_v52 = vunpack.i.h.bf16 %v1784_v48  ;;  %v1785_v53 = vunpack.i.l.bf16 %v1784_v48 }
 0x828   : > { %v1781_v54 = vunpack.i.h.bf16 %v1779_v49  ;;  %v1780_v55 = vunpack.i.l.bf16 %v1779_v49 }
 0x829   : > { %v1640_v57 = vpack.c.bf16 %v1786_v52, %v1785_v53 }
 0x82a   : > { %v1636_v56 = vpack.c.bf16 %v1781_v54, %v1780_v55  ;;  %v989_v60 = vpop.permute.xlu1 %988 }
 0x82b   : > { %v991_v61 = vpop.permute.xlu0 %990 }
 0x82c   : > { %1637 = vmatprep.subr.bf16.mxu1 %v1636_v56 }
 0x82d   : > { %v1813_v58 = vpop.eup %1812  ;;  %1639 = vmatpush3.bf16.msra.mxu1 %v1636_v56 }
 0x82e   : > { %v1815_v9 = vpop.eup %1814  ;;  %1642 = vmatprep.subr.msk.bf16.mxu1 %vm2304_vm2, %v1640_v57  ;;  %v897_v59 = vmul.f32 %v1813_v58, %v1809_v42 }
 0x82f   : > { %v896_v8 = vmul.f32 %v1815_v9, %v1811_v43 }
 0x831   : > { %1574 = vmatprep.mubr.msk.f32.mxu1 %vm469_vm3, %v896_v8 }
 0x832   : > { %1575 = vmatmul.mubr.msk.f32.vlgmr.msra.gmra.mrb[6].mxu1 %vm469_vm3, %v897_v59 }
 0x833   : > { %1581 = vmatprep.mubr.msk.f32.mxu1 %vm385_vm1, %v989_v60 }
 0x836   : > { %1645 = vmatpush3.bf16.xpose.msk.msra.mxu1 %vm2304_vm2, %v1640_v57 }
 0x83d   : > { %1582 = vmatmul.mubr.msk.f32.vlgmr.msra.gmra.mrb[8].mxu1 %vm385_vm1, %v991_v61 }
 0x905   : > { %v1576_v62 = vpop.f32.mrb[6].mxu1 }
 0x906   : > { %v976_v63 = vpop.f32.mrb[7].mxu1 }
 0x910   : > { %v1583_v2 = vpop.f32.mrb[8].mxu1 }
 0x911   : > { %v1076_v3 = vadd.f32 %v1583_v2, %v987_v0  ;;  %v1070_v4 = vpop.f32.mrb[9].mxu1 }
 0x912   : > { %v1071_v5 = vadd.f32 %v1070_v4, %v986_v1 }
 0x913   : > { %v1082_v6 = vsel %vm469_vm3, %v1076_v3, -inf }
 0x914   : > { %1083 = vmax.xlane.f32.xlu0 %v1082_v6  ;;  %v1079_v7 = vsel %vm469_vm3, %v1071_v5, -inf }
 0x915   : > { %1080 = vmax.xlane.f32.xlu1 %v1079_v7 }
 0x9a1   : > { %v1084_v11 = vpop.xlane.xlu0 %1083 }
 0x9a2   : > { %v1086_v14 = vsub.f32 %v1076_v3, %v1084_v11  ;;  %v1081_v12 = vpop.xlane.xlu1 %1080 }
 0x9a3   : > { %v1085_v13 = vsub.f32 %v1071_v5, %v1081_v12 }
 0x9a4   : > { %v1089_v15 = vmul.f32 1.442695, %v1086_v14 }
 0x9a5   : > { %v1087_v16 = vmul.f32 1.442695, %v1085_v13 }
 0x9a6   : > { %1816 = vpow2.f32 %v1089_v15 }
 0x9a7   : > { %1818 = vpow2.f32 %v1087_v16 }
 0x9b0   : > { %v1817_v17 = vpop.eup %1816 }
 0x9b1   : > { %v1819_v18 = vpop.eup %1818  ;;  %v1094_v19 = vsel %vm469_vm3, %v1817_v17, 0.0 }
 0x9b2   : > { %1095 = vadd.xlane.f32.xlu1 %v1094_v19  ;;  %v1091_v20 = vsel %vm469_vm3, %v1819_v18, 0.0 }
 0x9b3   : > { %1092 = vadd.xlane.f32.xlu0 %v1091_v20 }
 0x9c3   : > { %1190 = vrot.lane.b32.xlu1 %v2352_v27, %s2030_s17 }
 0x9c7   : > { %1192 = vrot.lane.b32.xlu1 %v2350_v26, %s2030_s17 }
 0x9c9   : > { %1788 = vrot.lane.b32.xlu0 %v2299_v10, %s2031_s10  ;;  %v1219_v10 = vld [vmem:[#allocation8] sm:$0xff]  ;;  %s1944_s10 = scalar_lea.vmem %s1943_s15, 512 }
 0x9ca   : > { %v1650_v33 = vpack.c.bf16 %v1220_v31, %v1219_v10  ;;  %p1946_p1 = scmp.lt.s32.totalorder %s1944_s10, %s1938_s22 }
 0x9cb   : > { %1200 = vrot.lane.b32.xlu1 %v1576_v62, %s2032_s11 }
 0x9cc   : > { %p1947_p2 = por %p1946_p1, %p1945_p12 }
 0x9cd   : > { %1198 = vrot.lane.b32.xlu0 %v976_v63, %s2032_s11 }
 0x9ce   : > { %p1948_p4 = pnand %p1947_p2, %p1941_p7 }
 0xa3f   : > { %v1096_v21 = vpop.xlane.xlu1 %1095 }
 0xa40   : > { %1820 = vrcp.f32 %v1096_v21  ;;  %v1093_v22 = vpop.xlane.xlu0 %1092 }
 0xa41   : > { %1822 = vrcp.f32 %v1093_v22 }
 0xa43   : > { %v1191_v38 = vpop.permute.xlu1 %1190 }
 0xa44   : > { %v1789_v23 = vpop.permute.xlu0 %1788  ;;  %v1212_v42 = vsel %vm385_vm1, %v2332_v51, %v1191_v38  ;;  %v1470_v51 = vld [vmem:[%s2451_s4] ss:$0 sm:$0xff] }
 0xa45   : > { %v1791_v24 = vunpack.i.h.bf16 %v1789_v23  ;;  %v1790_v25 = vunpack.i.l.bf16 %v1789_v23 }
 0xa47   : > { %v1646_v28 = vpack.c.bf16 %v1791_v24, %v1790_v25  ;;  %v1193_v39 = vpop.permute.xlu1 %1192 }
 0xa48   : > { %v1199_v41 = vpop.permute.xlu0 %1198  ;;  %v1213_v44 = vsel %vm385_vm1, %v2330_v50, %v1193_v39 }
 0xa49   : > { %1647 = vmatprep.subr.bf16.mxu0 %v1646_v28  ;;  %v1214_v45 = vsel %vm469_vm3, %v1212_v42, %v1199_v41 }
 0xa4a   : > { %v1821_v29 = vpop.eup %1820  ;;  %1649 = vmatpush3.bf16.msra.mxu0 %v1646_v28 }
 0xa4b   : > { %v1823_v27 = vpop.eup %1822  ;;  %v1100_v26 = vmul.f32 %v1821_v29, %v1817_v17  ;;  %1651 = vmatprep.subr.bf16.mxu0 %v1650_v33  ;;  %v1201_v40 = vpop.permute.xlu1 %1200 }
 0xa4c   : > { %v1099_v30 = vmul.f32 %v1823_v27, %v1819_v18  ;;  %v1215_v47 = vsel %vm469_vm3, %v1213_v44, %v1201_v40 }
 0xa4e   : > { %1588 = vmatprep.mubr.msk.f32.mxu0 %vm469_vm3, %v1099_v30 }
 0xa4f   : > { %1589 = vmatmul.mubr.msk.f32.vlgmr.msra.gmra.mrb[6].mxu0 %vm469_vm3, %v1100_v26 }
 0xa50   : > { %1653 = vmatpush3.bf16.msra.mxu0 %v1650_v33 }
 0xa51   : > { %1655 = vmatprep.subr.bf16.mxu0 %v1654_v35 }
 0xa54   : > { %1657 = vmatpush3.bf16.msra.mxu0 %v1654_v35 }
 0xb22   : > { %v1590_v36 = vpop.f32.mrb[6].mxu0 }
 0xb23   : > { %1208 = vrot.lane.b32.xlu1 %v1590_v36, %s2033_s6  ;;  %v1179_v37 = vpop.f32.mrb[7].mxu0 }
 0xb24   : > { %1206 = vrot.lane.b32.xlu0 %v1179_v37, %s2033_s6 }
 0xb95   : > { %v1209_v43 = vpop.permute.xlu1 %1208 }
 0xb96   : > { %v1207_v46 = vpop.permute.xlu0 %1206  ;;  %v1218_v49 = vsel %vm1216_vm4, %v1215_v47, %v1209_v43 }
 0xb97   : > { %v1217_v48 = vsel %vm1216_vm4, %v1214_v45, %v1207_v46 }
 0xb98   : > { %1599 = vmatprep.mubr.msk.f32.mxu0 %vm295_vm0, %v1217_v48 }
 0xb99   : > { %1600 = vmatmul.mubr.msk.f32.vlgmr.msra.gmra.mrb[8].mxu0 %vm295_vm0, %v1218_v49 }
 0xc6c   : > { %v1601_v50 = vpop.f32.mrb[8].mxu0 }
 0xc6d   : > { %v1308_v52 = vadd.f32 %v1601_v50, %v1470_v51  ;;  %v1302_v53 = vpop.f32.mrb[9].mxu0 }
 0xc6e   : > { %v1303_v54 = vadd.f32 %v1470_v51, %v1302_v53 }
 0xc6f   : > { %1312 = vst.msk [vmem:[%s286_s23 + $0x8] sm:$0xff] %vm295_vm0, %v1308_v52 }
 0xc70   : > { %1311 = vst.msk [vmem:[%s286_s23] sm:$0xff] %vm295_vm0, %v1303_v54 }
 0xc71   : > { %1951 = shalt.err (!%p1948_p4)
}
 0xc72   : > { %s1952_s11 = scalar_lea.hbm %s2400_s12, 256  ;;  %s1956_s26 = scalar_lea.hbm %s2452_s5, 512 }
 0xc73   : > { %p1953_p9 = scmp.ne.s32.totalorder %s2400_s12, %s1952_s11  ;;  %p1957_p8 = scmp.lt.u32.totalorder %s2400_s12, %s2452_s5 }
 0xc74   : > { %p1958_p13 = scmp.lt.u32.totalorder %s1956_s26, %s1952_s11  ;;  %p1960_p10 = scmp.lt.u32.totalorder %s1952_s11, %s2400_s12 }
 0xc75   : > { %p1954_p0 = pnand %p1953_p9, %p2220_p5 }
 0xc76   : > { %p1959_p6 = por %p1958_p13, %p1957_p8 }
 0xc77   : > { %p1955_p11 = pneg %p1954_p0 }
 0xc78   : > { %p1961_p3 = por %p1960_p10, %p1959_p6 }
 0xc7a   : > { %p1962_p7 = pnand %p1961_p3, %p1955_p11 }
 0xc7c   : > { %1965 = shalt.err (!%p1962_p7)
}
 0xc7d   : > { %s2035_s16 = smov 128  }
 0xc7e   : > { %1672 = dma.vmem_to_hbm [thread:$0]  (%p2220_p5), %s2395_s27, 256, %s2400_s12, %s1314_s8, %s2035_s16, %s2035_s16, %s2030_s17  }
 0xc7f PF: > { %s1342_s28 = sand.u32 1, %s2000_s18   ;;  %p2472_p12 = scmp.ne.s32.totalorder %s2457_s25, 0 }
 0xc80   : > { %p2473_p1 = scmp.ge.s32.totalorder %s2012_s21, 2  ;;  %s1343_s22 = scalar_lea.sflag [#allocation4], %s1342_s28 }
 0xc82   : > { %p1689_p2 = pnand %p2473_p1, %p2472_p12 }
 0xc84   : > { %1995 = dma.done.wait (!%p1689_p2), %s1343_s22, 256  }
 0xc85   : > { %1997 = vsyncadd (!%p1689_p2), %s1343_s22, 4294967040  ;;  %p20_p4 = scmp.ge.s32.totalorder %s2206_s14, 4   ;;  %s2474_s18 = smov %s2004_s19 }
 0xc86   : > { %s2475_s19 = smov %s2008_s20  ;;  %s2476_s20 = smov %s2216_s30 }
 0xc87   : > { %s2477_s21 = smov %s2206_s14  ;;  %22 = sbr.rel (!%p20_p4) target bundleno = 7 (0x7), region = 100 }
 0xc8e   :  { %1348 = vsyncpa [#allocation3], 1 }
 0xc8f   :  { %1350 = vsyncpa [#allocation3 + $0x1], 1 }
 0xc90   :  { %1351 = vsyncpa [#allocation6], 1 }
 0xc91   :  { %1352 = vsyncpa [#allocation9], 1 }
 0xc92   :  { %1353 = vsyncpa [#allocation4], 1 }
 0xc93   :  { %1355 = vsyncpa [#allocation4 + $0x1], 1 }

</bundles_post_ra>
